<compile_context>
chip_gen: v6e
topology: v6e:2x2x1
jax: 0.10.0
libtpu: 0.0.40
codegen_flags: <defaults>
</compile_context>

<pallas_src>
import jax
import jax.numpy as jnp
from jax.experimental import pallas as pl
from jax.experimental.pallas import tpu as pltpu


_BIG_WEIGHT_BYTES = 4 * 1024 * 1024   # above this, single-buffer the resident weight blocks


# --------------------------------------------------------------------------------------
# Kernel
# --------------------------------------------------------------------------------------
def coupling_fwd_kernel(x_ref, w1_ref, b1_ref, w2_ref, b2_ref, y_ref):
    dim = x_ref.shape[1]
    half = dim // 2
    mm_dtype = w1_ref.dtype                              # bf16 (or f32) matmul operands

    # In-kernel chunk(2, dim=1): lane-aligned slices when half % 128 == 0.
    zl = x_ref[:, :half]                                 # (TN, half), x dtype
    zr = x_ref[:, half:].astype(jnp.float32)             # (TN, half), f32 elementwise math

    # self.nn(zl): Linear -> Tanh -> Linear -> Tanh.  MXU matmuls in mm_dtype with f32
    # accumulation; bias add / tanh stay f32 (v5e has no bf16 VALU/EUP).
    h = jnp.tanh(
        jnp.dot(zl.astype(mm_dtype), w1_ref[...],
                preferred_element_type=jnp.float32) + b1_ref[...]
    )                                                    # (TN, dim) f32
    out = jnp.tanh(
        jnp.dot(h.astype(mm_dtype), w2_ref[...],
                preferred_element_type=jnp.float32) + b2_ref[...]
    )                                                    # (TN, dim) f32

    s = out[:, :half]                                    # (TN, half)
    b = out[:, half:]                                    # (TN, half)

    # torch.exp(torch.log(s)) == where(s < 0, NaN, s): same NaN semantics, no EUP passes.
    s_eff = jnp.where(s < 0, jnp.float32(jnp.nan), s)
    yr = zr * s_eff + b                                  # (TN, half) f32

    # cat([zl, yr], dim=1): two lane-aligned stores when half % 128 == 0.
    y_ref[:, :half] = zl.astype(y_ref.dtype)
    y_ref[:, half:] = yr.astype(y_ref.dtype)


# --------------------------------------------------------------------------------------
# Tile-size / VMEM heuristics
# --------------------------------------------------------------------------------------
def _vmem_budget_bytes():
    """Generation-aware VMEM budget: ~3/4 of per-core capacity (96 MiB on v5e/v6e's 128 MiB,
    48 MiB on v7x's 64 MiB); conservative fallback if the query is unavailable."""
    cap = None
    try:
        cap = getattr(pltpu.get_tpu_info(), "vmem_capacity_bytes", None)
    except Exception:
        cap = None
    if not cap:
        cap = 64 * 1024 * 1024                           # safe on every generation
    return (int(cap) * 3) // 4


def _choose_max_batch_tile(dim, x_itemsize, mm_itemsize, vmem_budget_bytes):
    """Largest batch tile whose VMEM footprint fits the budget (weights counted once)."""
    half = dim // 2
    weight_bytes = (half * dim + dim * dim) * mm_itemsize + 2 * dim * 4
    single_buffered = dim * dim * mm_itemsize >= _BIG_WEIGHT_BYTES
    resident = weight_bytes * (1 if single_buffered else 2)
    # Per batch row: double-buffered x and y blocks + ~3*dim f32 of live intermediates.
    per_row = 2 * dim * x_itemsize * 2 + 3 * dim * 4
    avail = vmem_budget_bytes - resident
    tile = avail // per_row if avail > 0 else 128
    # TODO(synk): for dim >= ~2048 on v7x, stream w2 over a K grid axis with an f32 VMEM
    # accumulator instead of keeping the full dim x dim weight resident.
    tile = int(max(128, min(tile, 1024)))                # never below 128 rows (MXU M util)
    return (tile // 256) * 256 if tile >= 256 else (tile // 8) * 8


def _pick_block_n(n, max_tile):
    """Pick a batch tile that divides n (no pad pre-pass) and is MXU / megacore friendly."""
    if n <= max_tile:
        # Prefer two tiles when the batch is big enough: keeps M >= 256 per tile and lets
        # dimension_semantics=("parallel",) feed both TensorCores on v7x.
        h = n // 2
        if n >= 512 and n % 2 == 0 and h % 8 == 0 and h <= max_tile:
            return h
        return n                     # single tile; block_shape == full array extent is legal
    hi = (max_tile // 8) * 8
    for cand in range(hi, 127, -8):  # largest multiple-of-8 divisor of n that is >= 128
        if n % cand == 0:
            return cand
    return hi                        # no aligned divisor: wrapper pads (rare fallback)


# --------------------------------------------------------------------------------------
# Wrapper
# --------------------------------------------------------------------------------------
def coupling_forward(x, w1, b1, w2, b2, *, block_n=None, matmul_dtype=jnp.bfloat16,
                     vmem_budget_bytes=None):
    n, dim = x.shape
    half = dim // 2
    assert dim % 2 == 0
    assert w1.shape == (half, dim) and w2.shape == (dim, dim)
    assert b1.shape == (1, dim) and b2.shape == (1, dim)

    # Matmul operands in bf16 (MXU-native on all generations); biases stay f32.
    w1m = w1.astype(matmul_dtype)
    w2m = w2.astype(matmul_dtype)
    b1f = b1.astype(jnp.float32)
    b2f = b2.astype(jnp.float32)

    x_itemsize = jnp.dtype(x.dtype).itemsize
    mm_itemsize = jnp.dtype(matmul_dtype).itemsize
    if vmem_budget_bytes is None:
        vmem_budget_bytes = _vmem_budget_bytes()
    if block_n is None:
        max_tile = _choose_max_batch_tile(dim, x_itemsize, mm_itemsize, vmem_budget_bytes)
        block_n = _pick_block_n(n, max_tile)
    block_n = int(block_n)

    grid_n = pl.cdiv(n, block_n)
    n_pad = grid_n * block_n
    x_in = x
    if n_pad != n:
        # Rare fallback only (batch with no aligned divisor <= max tile).
        # TODO(synk): replace with a masked last-tile store to avoid this HBM copy.
        x_in = jnp.pad(x, ((0, n_pad - n), (0, 0)))

    # Single-buffer the constant-index weight blocks only when they are big enough to
    # matter for VMEM (e.g. large dim on v7x's 64 MiB); tiny weights keep the default.
    single_buffer_weights = dim * dim * mm_itemsize >= _BIG_WEIGHT_BYTES
    wkw = dict(pipeline_mode=pl.Buffered(1)) if single_buffer_weights else {}

    x_spec = pl.BlockSpec((block_n, dim), lambda i: (i, 0))        # batch-tiled input
    y_spec = pl.BlockSpec((block_n, dim), lambda i: (i, 0))        # batch-tiled output
    w1_spec = pl.BlockSpec((half, dim), lambda i: (0, 0), **wkw)   # VMEM-resident weights
    w2_spec = pl.BlockSpec((dim, dim), lambda i: (0, 0), **wkw)
    b_spec = pl.BlockSpec((1, dim), lambda i: (0, 0), **wkw)

    flops = 2 * n_pad * half * dim + 2 * n_pad * dim * dim
    transcendentals = 2 * n_pad * dim
    bytes_accessed = (x_itemsize * 2 * n_pad * dim                 # x in + y out
                      + mm_itemsize * (half * dim + dim * dim)     # weights
                      + 4 * 2 * dim)                               # biases

    y = pl.pallas_call(
        coupling_fwd_kernel,
        out_shape=jax.ShapeDtypeStruct((n_pad, dim), x.dtype),
        grid=(grid_n,),
        in_specs=[x_spec, w1_spec, b_spec, w2_spec, b_spec],
        out_specs=y_spec,
        compiler_params=pltpu.CompilerParams(
            dimension_semantics=("parallel",),        # shard batch tiles across TCs (v7x)
            vmem_limit_bytes=int(vmem_budget_bytes),
        ),
        cost_estimate=pl.CostEstimate(
            flops=flops, transcendentals=transcendentals, bytes_accessed=bytes_accessed),
    )(x_in, w1m, b1f, w2m, b2f)

    return y if n_pad == n else y[:n]


# --------------------------------------------------------------------------------------
# Pure-JAX reference + test helpers
# --------------------------------------------------------------------------------------
def coupling_forward_ref(x, w1, b1, w2, b2, *, matmul_dtype=None):
    """Mirrors the PyTorch module (explicit exp(log(s))). If matmul_dtype is given, the
    matmul operands are cast the same way as in the kernel (for matched-precision tests)."""
    dim = x.shape[1]
    half = dim // 2
    zl, zr = x[:, :half], x[:, half:]
    if matmul_dtype is None:
        zlm, w1m, w2m = zl, w1, w2
        cast = lambda a: a
    else:
        zlm, w1m, w2m = zl.astype(matmul_dtype), w1.astype(matmul_dtype), w2.astype(matmul_dtype)
        cast = lambda a: a.astype(matmul_dtype)
    h = jnp.tanh(jnp.dot(zlm, w1m, preferred_element_type=jnp.float32) + b1)
    out = jnp.tanh(jnp.dot(cast(h), w2m, preferred_element_type=jnp.float32) + b2)
    s, b = out[:, :half], out[:, half:]
    yr = zr.astype(jnp.float32) * jnp.exp(jnp.log(s)) + b
    return jnp.concatenate([zl, yr.astype(x.dtype)], axis=1)


def _match_fraction(y, y_ref, atol, rtol):
    """Fraction of elements that are either both-NaN or both-finite-and-close.
    (bf16 rounding can flip sign(s) where the pre-activation is ~0, turning a finite value
    into NaN or vice versa under the module's exp(log(s)) semantics; a tiny allowance for
    such borderline elements keeps the check deterministic and non-flaky.)"""
    y = jnp.asarray(y, jnp.float32)
    y_ref = jnp.asarray(y_ref, jnp.float32)
    both_nan = jnp.isnan(y) & jnp.isnan(y_ref)
    close = (~jnp.isnan(y)) & (~jnp.isnan(y_ref)) & (
        jnp.abs(y - y_ref) <= (atol + rtol * jnp.abs(y_ref)))
    return float(jnp.mean((both_nan | close).astype(jnp.float32)))


def _make_params(key, n, dim):
    kx, k1, k2, k3, k4 = jax.random.split(key, 5)
    x = jax.random.normal(kx, (n, dim), dtype=jnp.float32)
    w1 = 0.5 * jax.random.normal(k1, (dim // 2, dim), dtype=jnp.float32)  # Linear(dim//2, dim)^T
    b1 = 0.1 * jax.random.normal(k2, (1, dim), dtype=jnp.float32)
    w2 = 0.5 * jax.random.normal(k3, (dim, dim), dtype=jnp.float32)       # Linear(dim, dim)^T
    b2 = 0.1 * jax.random.normal(k4, (1, dim), dtype=jnp.float32)
    return x, w1, b1, w2, b2


if __name__ == "__main__":
    key = jax.random.PRNGKey(0)
    k_big, k_toy = jax.random.split(key, 2)

    # Lane-aligned demo: dim=256 (half=128), n=512 -> block_n=256, grid=2 (software-pipelined,
    # one tile per TensorCore on v7x). No wrapper-side slice/pad copies.
    n, dim = 512, 256
    x, w1, b1, w2, b2 = _make_params(k_big, n, dim)
    y = jax.block_until_ready(coupling_forward(x, w1, b1, w2, b2))
    assert y.shape == (n, dim)
    # Left half is a pure pass-through of zl: must match bit-exactly.
    assert bool(jnp.array_equal(y[:, : dim // 2], x[:, : dim // 2]))
    # Compare against a reference with matching matmul precision (bf16 MXU operands).
    y_ref = coupling_forward_ref(x, w1, b1, w2, b2, matmul_dtype=jnp.bfloat16)
    assert _match_fraction(y, y_ref, atol=1e-2, rtol=1e-2) >= 0.999

    # Module's native toy configuration: CouplingLayer(dim=2) on a (10, 2) batch.
    # Single full-extent tile (block_shape == array shape), no padding; correctness only.
    n2, dim2 = 10, 2
    x2, w1_2, b1_2, w2_2, b2_2 = _make_params(k_toy, n2, dim2)
    y2 = jax.block_until_ready(coupling_forward(x2, w1_2, b1_2, w2_2, b2_2))
    assert y2.shape == (n2, dim2)
    assert bool(jnp.array_equal(y2[:, : dim2 // 2], x2[:, : dim2 // 2]))
    y2_ref = coupling_forward_ref(x2, w1_2, b1_2, w2_2, b2_2, matmul_dtype=jnp.bfloat16)
    assert _match_fraction(y2, y2_ref, atol=1e-2, rtol=1e-2) >= 0.999

    print("KERNEL_OK")
</pallas_src>

<mosaic_0001>
module attributes {stable_mosaic.version = 11 : i64} {
  func.func @coupling_fwd_kernel(%arg0: i32, %arg1: memref<256x256xf32, #tpu.memory_space<vmem>>, %arg2: memref<128x256xbf16, #tpu.memory_space<vmem>>, %arg3: memref<1x256xf32, #tpu.memory_space<vmem>>, %arg4: memref<256x256xbf16, #tpu.memory_space<vmem>>, %arg5: memref<1x256xf32, #tpu.memory_space<vmem>>, %arg6: memref<256x256xf32, #tpu.memory_space<vmem>>) attributes {dimension_semantics = [#tpu.dimension_semantics<parallel>], iteration_bounds = array<i64: 2>, scalar_prefetch = 0 : i64, scratch_operands = 0 : i64, tpu.core_type = #tpu.core_type<tc>, window_params = [{transform_indices = @transform_0, window_bounds = array<i64: 256, 256>}, {pipeline_mode = #tpu.pipeline_mode<synchronous>, transform_indices = @transform_1, window_bounds = array<i64: 128, 256>}, {pipeline_mode = #tpu.pipeline_mode<synchronous>, transform_indices = @transform_2, window_bounds = array<i64: 1, 256>}, {pipeline_mode = #tpu.pipeline_mode<synchronous>, transform_indices = @transform_3, window_bounds = array<i64: 256, 256>}, {pipeline_mode = #tpu.pipeline_mode<synchronous>, transform_indices = @transform_4, window_bounds = array<i64: 1, 256>}, {transform_indices = @transform_5, window_bounds = array<i64: 256, 256>}]} {
    %c0 = arith.constant 0 : index
    %c0_0 = arith.constant 0 : index
    %0 = vector.load %arg1[%c0, %c0_0] : memref<256x256xf32, #tpu.memory_space<vmem>>, vector<256x128xf32>
    %c0_1 = arith.constant 0 : index
    %c128 = arith.constant 128 : index
    %1 = vector.load %arg1[%c0_1, %c128] : memref<256x256xf32, #tpu.memory_space<vmem>>, vector<256x128xf32>
    %2 = arith.truncf %0 : vector<256x128xf32> to vector<256x128xbf16>
    %c0_2 = arith.constant 0 : index
    %c0_3 = arith.constant 0 : index
    %3 = vector.load %arg2[%c0_2, %c0_3] : memref<128x256xbf16, #tpu.memory_space<vmem>>, vector<128x256xbf16>
    %cst = arith.constant dense<0.000000e+00> : vector<256x256xf32>
    %4 = tpu.matmul %2, %3, %cst {dimension_numbers = #tpu.dot_dimension_numbers<[1], [0], [0], [1], [0, 0, 1, 1], [], []>} : vector<256x128xbf16>, vector<128x256xbf16>, vector<256x256xf32> -> vector<256x256xf32>
    %c0_4 = arith.constant 0 : index
    %c0_5 = arith.constant 0 : index
    %5 = vector.load %arg3[%c0_4, %c0_5] : memref<1x256xf32, #tpu.memory_space<vmem>>, vector<1x256xf32>
    %6 = vector.broadcast %5 : vector<1x256xf32> to vector<256x256xf32>
    %7 = arith.addf %4, %6 : vector<256x256xf32>
    %8 = math.tanh %7 : vector<256x256xf32>
    %9 = arith.truncf %8 : vector<256x256xf32> to vector<256x256xbf16>
    %c0_6 = arith.constant 0 : index
    %c0_7 = arith.constant 0 : index
    %10 = vector.load %arg4[%c0_6, %c0_7] : memref<256x256xbf16, #tpu.memory_space<vmem>>, vector<256x256xbf16>
    %cst_8 = arith.constant dense<0.000000e+00> : vector<256x256xf32>
    %11 = tpu.matmul %9, %10, %cst_8 {dimension_numbers = #tpu.dot_dimension_numbers<[1], [0], [0], [1], [0, 0, 1, 1], [], []>} : vector<256x256xbf16>, vector<256x256xbf16>, vector<256x256xf32> -> vector<256x256xf32>
    %c0_9 = arith.constant 0 : index
    %c0_10 = arith.constant 0 : index
    %12 = vector.load %arg5[%c0_9, %c0_10] : memref<1x256xf32, #tpu.memory_space<vmem>>, vector<1x256xf32>
    %13 = vector.broadcast %12 : vector<1x256xf32> to vector<256x256xf32>
    %14 = arith.addf %11, %13 : vector<256x256xf32>
    %15 = math.tanh %14 : vector<256x256xf32>
    %16 = vector.extract_strided_slice %15 {offsets = [0, 0], sizes = [256, 128], strides = [1, 1]} : vector<256x256xf32> to vector<256x128xf32>
    %17 = vector.extract_strided_slice %15 {offsets = [0, 128], sizes = [256, 128], strides = [1, 1]} : vector<256x256xf32> to vector<256x128xf32>
    %cst_11 = arith.constant 0.000000e+00 : f32
    %18 = vector.broadcast %cst_11 : f32 to vector<256x128xf32>
    %19 = arith.cmpf olt, %16, %18 : vector<256x128xf32>
    %cst_12 = arith.constant 0x7FC00000 : f32
    %20 = vector.broadcast %cst_12 : f32 to vector<256x128xf32>
    %21 = arith.select %19, %20, %16 : vector<256x128xi1>, vector<256x128xf32>
    %22 = arith.mulf %1, %21 : vector<256x128xf32>
    %23 = arith.addf %22, %17 : vector<256x128xf32>
    %c0_13 = arith.constant 0 : index
    %c0_14 = arith.constant 0 : index
    %24 = vector.load %arg6[%c0_13, %c0_14] : memref<256x256xf32, #tpu.memory_space<vmem>>, vector<256x128xf32>
    tpu.vector_store %arg6[%c0_13, %c0_14], %0 {strides = array<i32>} : memref<256x256xf32, #tpu.memory_space<vmem>>, vector<256x128xf32>,
    %c0_15 = arith.constant 0 : index
    %c128_16 = arith.constant 128 : index
    %25 = vector.load %arg6[%c0_15, %c128_16] : memref<256x256xf32, #tpu.memory_space<vmem>>, vector<256x128xf32>
    tpu.vector_store %arg6[%c0_15, %c128_16], %23 {strides = array<i32>} : memref<256x256xf32, #tpu.memory_space<vmem>>, vector<256x128xf32>,
    return
  }
  func.func @transform_0(%arg0: i32) -> (i32, i32) {
    %c0_i32 = arith.constant 0 : i32
    %c0_i32_0 = arith.constant 0 : i32
    return %arg0, %c0_i32 : i32, i32
  }
  func.func @transform_1(%arg0: i32) -> (i32, i32) {
    %c0_i32 = arith.constant 0 : i32
    %c0_i32_0 = arith.constant 0 : i32
    %c0_i32_1 = arith.constant 0 : i32
    return %c0_i32, %c0_i32_0 : i32, i32
  }
  func.func @transform_2(%arg0: i32) -> (i32, i32) {
    %c0_i32 = arith.constant 0 : i32
    %c0_i32_0 = arith.constant 0 : i32
    %c0_i32_1 = arith.constant 0 : i32
    return %c0_i32, %c0_i32_0 : i32, i32
  }
  func.func @transform_3(%arg0: i32) -> (i32, i32) {
    %c0_i32 = arith.constant 0 : i32
    %c0_i32_0 = arith.constant 0 : i32
    %c0_i32_1 = arith.constant 0 : i32
    return %c0_i32, %c0_i32_0 : i32, i32
  }
  func.func @transform_4(%arg0: i32) -> (i32, i32) {
    %c0_i32 = arith.constant 0 : i32
    %c0_i32_0 = arith.constant 0 : i32
    %c0_i32_1 = arith.constant 0 : i32
    return %c0_i32, %c0_i32_0 : i32, i32
  }
  func.func @transform_5(%arg0: i32) -> (i32, i32) {
    %c0_i32 = arith.constant 0 : i32
    %c0_i32_0 = arith.constant 0 : i32
    return %arg0, %c0_i32 : i32, i32
  }
}

</mosaic_0001>

<bundles_post_ra>
// kernel: tpu_custom_call.1
= control target key start
LH: loop header
LB: loop body
LE: loop exit
PB: predicated region body
PF: predicated region fallthrough
CT: control target
= control target key end

     0   :  { %10 = vsyncpa [#allocation3], 0  ;;  %s2859_s0 = inlined_call_operand.hbm [shape: f32[512,256], index: 0, kind: input, shape index: {}]   ;;  %s2860_s1 = inlined_call_operand.hbm [shape: bf16[128,256], index: 1, kind: input, shape index: {}]   ;;  %s2861_s2 = inlined_call_operand.vmem [shape: f32[1,256], index: 2, kind: input, shape index: {}]   ;;  %s2862_s3 = inlined_call_operand.hbm [shape: bf16[256,256], index: 3, kind: input, shape index: {}]   ;;  %s2863_s4 = inlined_call_operand.vmem [shape: f32[1,256], index: 4, kind: input, shape index: {}]   ;;  %s2864_s5 = inlined_call_operand.hbm [shape: f32[512,256], index: 5, kind: output, shape index: {}]  }
   0x1   :  { %12 = vsyncpa [#allocation3 + $0x1], 0 }
   0x2   :  { %13 = vsyncpa [#allocation6], 0 }
   0x3   :  { %14 = vsyncpa [#allocation4], 0 }
   0x4   :  { %16 = vsyncpa [#allocation4 + $0x1], 0  ;;  %s2210_s18 = smov 0   ;;  %s2212_s19 = smov 0  }
   0x5   :  { %s2214_s20 = smov 0   ;;  %s2216_s21 = smov 0  }
   0x6 LB: > { %s2231_s22 = sadd.s32 4294967295, %s2167_s21   ;;  %s1513_s23 = sadd.s32 4294967294, %s2167_s21   ;;  %s2167_s21 = sphi %s2216_s21, %s2886_s21   ;;  %s2163_s20 = sphi %s2214_s20, %s2885_s20   ;;  %s2159_s19 = sphi %s2212_s19, %s2884_s19   ;;  %s2155_s18 = sphi %s2210_s18, %s2883_s18  }
   0x7   : > { %p42_p0 = scmp.ne.s32.totalorder %s2159_s19, %s2155_s18  ;;  %p2865_p1 = scmp.eq.s32.totalorder %s2231_s22, 0 }
   0x8   : > { %p156_p3 = scmp.eq.s32.totalorder %s1513_s23, 1  ;;  %p1514_p5 = scmp.ge.s32.totalorder %s2167_s21, 1 }
   0x9   : > { %p2240_p4 = por %p2865_p1, %p42_p0  ;;  %p163_p7 = scmp.lt.s32.totalorder %s2167_s21, 3 }
   0xa   : > { %p2245_p6 = por %p156_p3, %p42_p0  ;;  %s2169_s27 = smov [#allocation5]  }
   0xb   : > { %s2869_s24 = scalar_select %p2240_p4, 1, 0 }
   0xc   : > { %s2870_s25 = scalar_select %p2245_p6, 1, 0 }
   0xd   : > { %p2250_p8 = pnand %p1514_p5, %p163_p7  ;;  %s175_s28 = sshll.u32 %s2169_s27, 4  ;;  %s176_s28 = int_to_ptr.vmem [resolvable:$true] %s175_s28 }
   0xe   : > { %s2170_s30 = smov [#allocation7]   ;;  %s2030_s7 = scalar_lea.vmem %s176_s28, 2048 }
   0xf   : > { %s2871_s26 = scalar_select %p2250_p8, 1, 0 }
  0x10   : > { %p1629_p9 = pneg %p2250_p8  ;;  %s191_s6 = sshll.u32 %s2170_s30, 4  ;;  %s192_s6 = int_to_ptr.vmem [resolvable:$true] %s191_s6 }
  0x11   : > { %p2031_p13 = scmp.ne.s32.totalorder %s176_s28, %s2030_s7  ;;  %p2038_p5 = scmp.lt.s32.totalorder %s176_s28, %s176_s28 }
  0x12   : > { %p2259_p11 = pnand %p1629_p9, %p2865_p1  ;;  %p2039_p7 = scmp.lt.s32.totalorder %s2030_s7, %s2030_s7 }
  0x14   : > { %p2021_p12 = pneg %p2259_p11  ;;  %p2040_p10 = por %p2039_p7, %p2038_p5 }
  0x16   : > { %p2033_p0 = pnand %p2031_p13, %p2021_p12 }
  0x18   : > { %p2034_p3 = pneg %p2033_p0 }
  0x1a   : > { %p2041_p9 = pnand %p2040_p10, %p2034_p3 }
  0x1c   : > { %2044 = shalt.err (!%p2041_p9)
}
  0x1d   : > { %s2171_s8 = smov 128   ;;  %s2172_s9 = smov 8  }
  0x1e   : > { %1632 = dma.hbm_to_vmem [thread:$0]  (!%p2259_p11), %s2860_s1, 2048, %s176_s28, [#allocation6], %s2171_s8, %s2171_s8, %s2172_s9  }
  0x1f   : > { %s2056_s12 = scalar_lea.vmem %s192_s6, 4096  ;;  %p2064_p2 = scmp.lt.s32.totalorder %s192_s6, %s192_s6 }
  0x20   : > { %p2057_p1 = scmp.ne.s32.totalorder %s192_s6, %s2056_s12  ;;  %p2065_p6 = scmp.lt.s32.totalorder %s2056_s12, %s2056_s12 }
  0x22   : > { %p2059_p13 = pnand %p2057_p1, %p2021_p12  ;;  %p2066_p5 = por %p2065_p6, %p2064_p2 }
  0x24   : > { %p2060_p0 = pneg %p2059_p13 }
  0x26   : > { %p2067_p10 = pnand %p2066_p5, %p2060_p0 }
  0x28   : > { %2070 = shalt.err (!%p2067_p10)
}
  0x29   : > { %1635 = dma.hbm_to_vmem [thread:$0]  (!%p2259_p11), %s2862_s3, 4096, %s192_s6, [#allocation6], %s2171_s8, %s2171_s8, %s2172_s9  }
  0x2a   : > { %s2282_s15 = sadd.s32 1, %s2167_s21   ;;  %s29_s16 = sadd.s32 1, %s2163_s20 }
  0x2b   : > { %s26_s17 = ssub.s32 %s2167_s21, %s2282_s15  ;;  %p36_p1 = scmp.ne.s32.totalorder %s2163_s20, %s2159_s19 }
  0x2c   : > { %p27_p2 = scmp.eq.s32.totalorder %s26_s17, 0  ;;  %p37_p6 = scmp.eq.s32.totalorder %s2167_s21, 0 }
  0x2d   : > { %p2873_p12 = scmp.eq.s32.totalorder %s2231_s22, 1  ;;  %p1646_p7 = scmp.lt.s32.totalorder %s2167_s21, 2 }
  0x2e   : > { %s2298_s27 = scalar_select %p27_p2, %s2163_s20, %s29_s16  }
  0x2f   : > { %p2292_p3 = por %p2873_p12, %p36_p1  ;;  %p38_p9 = por %p37_p6, %p36_p1 }
  0x30   : > { %s208_s28 = sand.u32 1, %s2163_s20   ;;  %s1582_s30 = sshll.u32 %s2167_s21, 13 }
  0x31   : > { %s2874_s23 = scalar_select %p2292_p3, 1, 0 }
  0x32   : > { %s1518_s29 = sshll.u32 %s208_s28, 9  ;;  %s2305_s8 = scalar_lea.hbm %s2859_s0, %s1582_s30 }
  0x33   : > { %s212_s9 = scalar_lea.vmem [#allocation2], %s1518_s29  ;;  %p2309_p11 = pnand %p1646_p7, %p38_p9 }
  0x34   : > { %s220_s10 = sshll.u32 %s212_s9, 4  ;;  %s2313_s12 = scalar_lea.sflag [#allocation3], %s208_s28  ;;  %s2307_s10 = int_to_ptr.vmem [resolvable:$true] %s220_s10 }
  0x35   : > { %s2071_s13 = scalar_lea.hbm %s2305_s8, 8192  ;;  %p2073_p0 = pneg %p2309_p11 }
  0x36   : > { %p2072_p13 = scmp.ne.s32.totalorder %s2305_s8, %s2071_s13  ;;  %s2076_s17 = scalar_lea.hbm %s2859_s0, 16384 }
  0x37   : > { %p2077_p1 = scmp.lt.s32.totalorder %s2305_s8, %s2859_s0  ;;  %p2078_p2 = scmp.lt.s32.totalorder %s2076_s17, %s2071_s13 }
  0x38   : > { %p2074_p5 = pnand %p2073_p0, %p2072_p13 }
  0x39   : > { %p2079_p6 = por %p2078_p2, %p2077_p1 }
  0x3a   : > { %p2075_p10 = pneg %p2074_p5 }
  0x3c   : > { %p2080_p12 = pnand %p2079_p6, %p2075_p10 }
  0x3e   : > { %2083 = shalt.err (!%p2080_p12)
}
  0x3f   : > { %s2084_s28 = scalar_lea.vmem %s2307_s10, 8192  ;;  %s2173_s6 = smov [#allocation2]  }
  0x40   : > { %p2085_p7 = scmp.ne.s32.totalorder %s2307_s10, %s2084_s28  ;;  %s2089_s7 = sshll.u32 %s2173_s6, 4  ;;  %s2090_s7 = int_to_ptr.vmem [resolvable:$false] %s2089_s7 }
  0x41   : > { %s2091_s9 = scalar_lea.vmem %s2090_s7, 16384  ;;  %p2092_p5 = scmp.lt.s32.totalorder %s2307_s10, %s2090_s7 }
  0x42   : > { %p2087_p9 = pnand %p2085_p7, %p2073_p0  ;;  %p2093_p3 = scmp.lt.s32.totalorder %s2091_s9, %s2084_s28 }
  0x44   : > { %p2088_p13 = pneg %p2087_p9  ;;  %p2094_p4 = por %p2093_p3, %p2092_p5 }
  0x46   : > { %p2095_p8 = pnand %p2094_p4, %p2088_p13 }
  0x48   : > { %2098 = shalt.err (!%p2095_p8)
}
  0x49   : > { %s2174_s13 = smov 256   ;;  %s2175_s14 = smov 16  }
  0x4a   : > { %1639 = dma.hbm_to_vmem [thread:$0]  (!%p2309_p11), %s2305_s8, 8192, %s2307_s10, %s2313_s12, %s2174_s13, %s2174_s13, %s2175_s14  }
  0x4b   : > { %p2876_p0 = scmp.ne.s32.totalorder %s2871_s26, 0 }
  0x4c   : > { %s2337_s16 = sand.u32 (!%p2876_p0), 1, %s2159_s19   ;;  %p2877_p4 = scmp.ne.s32.totalorder (!%p2876_p0), %s2869_s24, 0 }
  0x4d   : > { %232 = sbr.rel (%p2876_p0) target bundleno = 690 (0x2b2), region = 40  ;;  %s1523_s17 = sshll.u32 (!%p2876_p0), %s2337_s16, 9 }
  0x4e   : > { %s235_s29 = scalar_lea.sflag (!%p2876_p0), [#allocation3], %s2337_s16  ;;  %s2341_s30 = scalar_lea.vmem (!%p2876_p0), [#allocation2], %s1523_s17 }
  0x52   : > { %2142 = dma.done.wait (%p2877_p4), %s235_s29, 8192  }
  0x53   : > { %2144 = vsyncadd (%p2877_p4), %s235_s29, 4294959104  ;;  %p2878_p8 = scmp.eq.s32.totalorder %s2231_s22, 0 }
  0x55   : > { %2146 = dma.done.wait (%p2878_p8), [#allocation6], 6144   ;;  %p2879_p3 = pmov %p2878_p8 }
  0x56   : > { %v2176_v0 = vmov 0   ;;  %v1691_v1 = vld [vmem:[#allocation5 + $0x74] ss:$8 sps:$4 sm:$0xff]   ;;  %v1693_v2 = vld [vmem:[#allocation5 + $0x70] ss:$8 sps:$4 sm:$0xff]   ;;  %v2353_v10 = vld [vmem:[%s2341_s30] sm:$0xff] }
  0x57   : > { %2148 = vsyncadd (%p2879_p3), [#allocation6], 4294961152  ;;  %496 = vmatprep.mubr.bf16.mxu0 %v2176_v0  ;;  %464 = vmatprep.subr.bf16.mxu0 %v1691_v1  ;;  %v1694_v3 = vld [vmem:[#allocation5 + $0x64] ss:$8 sps:$4 sm:$0xff]   ;;  %v1696_v4 = vld [vmem:[#allocation5 + $0x60] ss:$8 sps:$4 sm:$0xff]  }
  0x58   : > { %465 = vmatpush1.bf16.msra.mxu0 %v1693_v2  ;;  %v1697_v5 = vld [vmem:[#allocation5 + $0x54] ss:$8 sps:$4 sm:$0xff]   ;;  %v1699_v6 = vld [vmem:[#allocation5 + $0x50] ss:$8 sps:$4 sm:$0xff]   ;;  %v1700_v7 = vld [vmem:[#allocation5 + $0x44] ss:$8 sps:$4 sm:$0xff]  }
  0x59   : > { %466 = vmatprep.subr.bf16.mxu0 %v1694_v3  ;;  %v1702_v8 = vld [vmem:[#allocation5 + $0x40] ss:$8 sps:$4 sm:$0xff]   ;;  %v1703_v9 = vld [vmem:[#allocation5 + $0x34] ss:$8 sps:$4 sm:$0xff]   ;;  %s2358_s24 = scalar_lea.vmem [#allocation8], %s1523_s17  ;;  %s1584_s12 = sshll.u32 %s2231_s22, 13 }
  0x5a   : > { %v2356_v11 = vld [vmem:[%s2341_s30 + $0x10] sm:$0xff]  ;;  %1342 = vst [vmem:[%s2358_s24] sm:$0xff] %v2353_v10  ;;  %v2363_v12 = vld [vmem:[%s2341_s30 + $0x20] sm:$0xff]  ;;  %s1421_s28 = sshll.u32 %s2358_s24, 4  ;;  %s2813_s9 = scalar_lea.hbm %s2864_s5, %s1584_s12  ;;  %s2815_s28 = int_to_ptr.vmem [resolvable:$true] %s1421_s28 }
  0x5b   : > { %v2366_v13 = vld [vmem:[%s2341_s30 + $0x30] sm:$0xff]  ;;  %1343 = vst [vmem:[%s2358_s24 + $0x10] sm:$0xff] %v2356_v11  ;;  %1344 = vst [vmem:[%s2358_s24 + $0x20] sm:$0xff] %v2363_v12  ;;  %v2375_v14 = vld [vmem:[%s2341_s30 + $0x40] sm:$0xff]  ;;  %v340_v62 = vpack.c.bf16 %v2356_v11, %v2353_v10  ;;  %s1407_s13 = scalar_lea.sflag [#allocation4], %s2337_s16  ;;  %s2099_s14 = scalar_lea.vmem %s2815_s28, 8192 }
  0x5c   : > { %467 = vmatpush1.bf16.msra.mxu0 %v1696_v4  ;;  %1345 = vst [vmem:[%s2358_s24 + $0x30] sm:$0xff] %v2366_v13  ;;  %v2378_v15 = vld [vmem:[%s2341_s30 + $0x50] sm:$0xff]  ;;  %v2381_v16 = vld [vmem:[%s2341_s30 + $0x60] sm:$0xff]  ;;  %1346 = vst [vmem:[%s2358_s24 + $0x40] sm:$0xff] %v2375_v14  ;;  %v341_v4 = vpack.c.bf16 %v2366_v13, %v2363_v12  ;;  %p2100_p11 = scmp.ne.s32.totalorder %s2815_s28, %s2099_s14  ;;  %p2880_p10 = scmp.ne.s32.totalorder %s2874_s23, 0 }
  0x5d   : > { %468 = vmatprep.subr.bf16.mxu0 %v1697_v5  ;;  %v1705_v17 = vld [vmem:[#allocation5 + $0x30] ss:$8 sps:$4 sm:$0xff]   ;;  %1347 = vst [vmem:[%s2358_s24 + $0x50] sm:$0xff] %v2378_v15  ;;  %1348 = vst [vmem:[%s2358_s24 + $0x60] sm:$0xff] %v2381_v16  ;;  %v2393_v19 = vld [vmem:[%s2341_s30 + $0x80] sm:$0xff]  ;;  %s2177_s22 = smov [#allocation8]  }
  0x5e   : > { %v2388_v18 = vld [vmem:[%s2341_s30 + $0x70] sm:$0xff]  ;;  %v1706_v21 = vld [vmem:[#allocation5 + $0x24] ss:$8 sps:$4 sm:$0xff]   ;;  %1350 = vst [vmem:[%s2358_s24 + $0x80] sm:$0xff] %v2393_v19  ;;  %v1708_v33 = vld [vmem:[#allocation5 + $0x20] ss:$8 sps:$4 sm:$0xff]   ;;  %p2101_p1 = pnand %p2100_p11, %p2880_p10 }
  0x5f   : > { %v2396_v20 = vld [vmem:[%s2341_s30 + $0x90] sm:$0xff]  ;;  %1349 = vst [vmem:[%s2358_s24 + $0x70] sm:$0xff] %v2388_v18  ;;  %v2405_v22 = vld [vmem:[%s2341_s30 + $0xa0] sm:$0xff]  ;;  %s2103_s17 = sshll.u32 %s2177_s22, 4  ;;  %s2104_s17 = int_to_ptr.vmem [resolvable:$false] %s2103_s17 }
  0x60   : > { %469 = vmatpush1.bf16.msra.mxu0 %v1699_v6  ;;  %1351 = vst [vmem:[%s2358_s24 + $0x90] sm:$0xff] %v2396_v20  ;;  %v2408_v23 = vld [vmem:[%s2341_s30 + $0xb0] sm:$0xff]  ;;  %v2411_v24 = vld [vmem:[%s2341_s30 + $0xc0] sm:$0xff]  ;;  %1352 = vst [vmem:[%s2358_s24 + $0xa0] sm:$0xff] %v2405_v22  ;;  %p2102_p2 = pneg %p2101_p1  ;;  %s2105_s29 = scalar_lea.vmem %s2104_s17, 16384 }
  0x61   : > { %470 = vmatprep.subr.bf16.mxu0 %v1700_v7  ;;  %1353 = vst [vmem:[%s2358_s24 + $0xb0] sm:$0xff] %v2408_v23  ;;  %v2418_v25 = vld [vmem:[%s2341_s30 + $0xd0] sm:$0xff]  ;;  %1354 = vst [vmem:[%s2358_s24 + $0xc0] sm:$0xff] %v2411_v24  ;;  %v2423_v26 = vld [vmem:[%s2341_s30 + $0xe0] sm:$0xff]  ;;  %p2106_p6 = scmp.lt.s32.totalorder %s2815_s28, %s2104_s17  ;;  %p2107_p12 = scmp.lt.s32.totalorder %s2105_s29, %s2099_s14 }
  0x62   : > { %v2426_v27 = vld [vmem:[%s2341_s30 + $0xf0] sm:$0xff]  ;;  %v346_v28 = vpack.c.bf16 %v2418_v25, %v2411_v24  ;;  %1355 = vst [vmem:[%s2358_s24 + $0xd0] sm:$0xff] %v2418_v25  ;;  %1356 = vst [vmem:[%s2358_s24 + $0xe0] sm:$0xff] %v2423_v26  ;;  %v2439_v30 = vld [vmem:[%s2341_s30 + $0x100] sm:$0xff] }
  0x63   : > { %v347_v29 = vpack.c.bf16 %v2426_v27, %v2423_v26  ;;  %1357 = vst [vmem:[%s2358_s24 + $0xf0] sm:$0xff] %v2426_v27  ;;  %v2442_v31 = vld [vmem:[%s2341_s30 + $0x110] sm:$0xff]  ;;  %v2445_v32 = vld [vmem:[%s2341_s30 + $0x120] sm:$0xff]  ;;  %1358 = vst [vmem:[%s2358_s24 + $0x100] sm:$0xff] %v2439_v30  ;;  %p2108_p7 = por %p2107_p12, %p2106_p6 }
  0x64   : > { %471 = vmatpush1.bf16.msra.mxu0 %v1702_v8  ;;  %v348_v34 = vpack.c.bf16 %v2442_v31, %v2439_v30  ;;  %1359 = vst [vmem:[%s2358_s24 + $0x110] sm:$0xff] %v2442_v31  ;;  %v2454_v35 = vld [vmem:[%s2341_s30 + $0x130] sm:$0xff]  ;;  %1360 = vst [vmem:[%s2358_s24 + $0x120] sm:$0xff] %v2445_v32  ;;  %v2459_v36 = vld [vmem:[%s2341_s30 + $0x140] sm:$0xff] }
  0x65   : > { %472 = vmatprep.subr.bf16.mxu0 %v1703_v9  ;;  %v2462_v37 = vld [vmem:[%s2341_s30 + $0x150] sm:$0xff]  ;;  %v349_v39 = vpack.c.bf16 %v2454_v35, %v2445_v32  ;;  %1361 = vst [vmem:[%s2358_s24 + $0x130] sm:$0xff] %v2454_v35  ;;  %1362 = vst [vmem:[%s2358_s24 + $0x140] sm:$0xff] %v2459_v36  ;;  %v2475_v41 = vld [vmem:[%s2341_s30 + $0x160] sm:$0xff]  ;;  %v342_v9 = vpack.c.bf16 %v2378_v15, %v2375_v14  ;;  %v374_v32 = vlaneseq  ;;  %p2109_p9 = pnand %p2108_p7, %p2102_p2 }
  0x66   : > { %v1709_v38 = vld [vmem:[#allocation5 + $0x14] ss:$8 sps:$4 sm:$0xff]   ;;  %v350_v40 = vpack.c.bf16 %v2462_v37, %v2459_v36  ;;  %1363 = vst [vmem:[%s2358_s24 + $0x150] sm:$0xff] %v2462_v37  ;;  %v2481_v43 = vld [vmem:[%s2341_s30 + $0x180] sm:$0xff]  ;;  %1364 = vst [vmem:[%s2358_s24 + $0x160] sm:$0xff] %v2475_v41 }
  0x67   : > { %v2478_v42 = vld [vmem:[%s2341_s30 + $0x170] sm:$0xff]  ;;  %1366 = vst [vmem:[%s2358_s24 + $0x180] sm:$0xff] %v2481_v43  ;;  %v2495_v46 = vld [vmem:[%s2341_s30 + $0x1a0] sm:$0xff] }
  0x68   : > { %473 = vmatpush1.bf16.msra.mxu0 %v1705_v17  ;;  %v351_v44 = vpack.c.bf16 %v2478_v42, %v2475_v41  ;;  %1365 = vst [vmem:[%s2358_s24 + $0x170] sm:$0xff] %v2478_v42  ;;  %v2490_v45 = vld [vmem:[%s2341_s30 + $0x190] sm:$0xff]  ;;  %1368 = vst [vmem:[%s2358_s24 + $0x1a0] sm:$0xff] %v2495_v46  ;;  %v2511_v50 = vld [vmem:[%s2341_s30 + $0x1c0] sm:$0xff]  ;;  %v343_v17 = vpack.c.bf16 %v2388_v18, %v2381_v16  ;;  %v345_v18 = vpack.c.bf16 %v2408_v23, %v2405_v22 }
  0x69   : > { %v2498_v47 = vld [vmem:[%s2341_s30 + $0x1b0] sm:$0xff]  ;;  %474 = vmatprep.subr.bf16.mxu0 %v1706_v21  ;;  %v352_v48 = vpack.c.bf16 %v2490_v45, %v2481_v43  ;;  %1367 = vst [vmem:[%s2358_s24 + $0x190] sm:$0xff] %v2490_v45  ;;  %v2517_v52 = vld [vmem:[%s2341_s30 + $0x1e0] sm:$0xff]  ;;  %1370 = vst [vmem:[%s2358_s24 + $0x1c0] sm:$0xff] %v2511_v50 }
  0x6a   : > { %v353_v49 = vpack.c.bf16 %v2498_v47, %v2495_v46  ;;  %1369 = vst [vmem:[%s2358_s24 + $0x1b0] sm:$0xff] %v2498_v47  ;;  %v2514_v51 = vld [vmem:[%s2341_s30 + $0x1d0] sm:$0xff]  ;;  %1372 = vst [vmem:[%s2358_s24 + $0x1e0] sm:$0xff] %v2517_v52  ;;  %v1712_v56 = vld [vmem:[#allocation5 + $0x4] ss:$8 sps:$4 sm:$0xff]  }
  0x6b   : > { %v1711_v53 = vld [vmem:[#allocation5 + $0x10] ss:$8 sps:$4 sm:$0xff]   ;;  %v354_v54 = vpack.c.bf16 %v2514_v51, %v2511_v50  ;;  %1371 = vst [vmem:[%s2358_s24 + $0x1d0] sm:$0xff] %v2514_v51  ;;  %v1717_v58 = vld [vmem:[#allocation7 + $0x74] ss:$8 sps:$4 sm:$0xff]  }
  0x6c   : > { %v2526_v55 = vld [vmem:[%s2341_s30 + $0x1f0] sm:$0xff]  ;;  %475 = vmatpush1.bf16.msra.mxu0 %v1708_v33  ;;  %v1714_v59 = vld [vmem:[#allocation5] ss:$8 sps:$4 sm:$0xff]   ;;  %v1720_v61 = vld [vmem:[#allocation7 + $0x64] ss:$8 sps:$4 sm:$0xff]   ;;  %1585 = vmatprep.subr.bf16.mxu1 %v1717_v58 }
  0x6d   : > { %v355_v57 = vpack.c.bf16 %v2526_v55, %v2517_v52  ;;  %1373 = vst [vmem:[%s2358_s24 + $0x1f0] sm:$0xff] %v2526_v55  ;;  %476 = vmatprep.subr.bf16.mxu0 %v1709_v38  ;;  %v1715_v60 = vld [vmem:[#allocation7 + $0x70] ss:$8 sps:$4 sm:$0xff]   ;;  %v1718_v63 = vld [vmem:[#allocation7 + $0x60] ss:$8 sps:$4 sm:$0xff]   ;;  %v344_v38 = vpack.c.bf16 %v2396_v20, %v2393_v19 }
  0x6e   : > { %1601 = vmatpush1.bf16.msra.mxu1 %v1715_v60  ;;  %v1723_v1 = vld [vmem:[#allocation7 + $0x54] ss:$8 sps:$4 sm:$0xff]   ;;  %v1721_v2 = vld [vmem:[#allocation7 + $0x50] ss:$8 sps:$4 sm:$0xff]   ;;  %v1726_v3 = vld [vmem:[#allocation7 + $0x44] ss:$8 sps:$4 sm:$0xff]  }
  0x6f   : > { %1586 = vmatprep.subr.bf16.mxu1 %v1720_v61  ;;  %v1724_v5 = vld [vmem:[#allocation7 + $0x40] ss:$8 sps:$4 sm:$0xff]   ;;  %v1729_v6 = vld [vmem:[#allocation7 + $0x34] ss:$8 sps:$4 sm:$0xff]   ;;  %v1727_v7 = vld [vmem:[#allocation7 + $0x30] ss:$8 sps:$4 sm:$0xff]  }
  0x70   : > { %477 = vmatpush1.bf16.msra.mxu0 %v1711_v53  ;;  %v1732_v8 = vld [vmem:[#allocation7 + $0x24] ss:$8 sps:$4 sm:$0xff]   ;;  %v1730_v10 = vld [vmem:[#allocation7 + $0x20] ss:$8 sps:$4 sm:$0xff]   ;;  %v1735_v11 = vld [vmem:[#allocation7 + $0x14] ss:$8 sps:$4 sm:$0xff]  }
  0x71   : > { %478 = vmatprep.subr.bf16.mxu0 %v1712_v56  ;;  %v1733_v12 = vld [vmem:[#allocation7 + $0x10] ss:$8 sps:$4 sm:$0xff]   ;;  %v1738_v13 = vld [vmem:[#allocation7 + $0x4] ss:$8 sps:$4 sm:$0xff]   ;;  %v1736_v14 = vld [vmem:[#allocation7] ss:$8 sps:$4 sm:$0xff]  }
  0x72   : > { %1602 = vmatpush1.bf16.msra.mxu1 %v1718_v63  ;;  %v1741_v15 = vld [vmem:[#allocation7 + $0xf4] ss:$8 sps:$4 sm:$0xff]   ;;  %v1739_v21 = vld [vmem:[#allocation7 + $0xf0] ss:$8 sps:$4 sm:$0xff]   ;;  %v1744_v33 = vld [vmem:[#allocation7 + $0xe4] ss:$8 sps:$4 sm:$0xff]  }
  0x73   : > { %1587 = vmatprep.subr.bf16.mxu1 %v1723_v1  ;;  %v1742_v16 = vld [vmem:[#allocation7 + $0xe0] ss:$8 sps:$4 sm:$0xff]   ;;  %v1747_v19 = vld [vmem:[#allocation7 + $0xd4] ss:$8 sps:$4 sm:$0xff]   ;;  %v1745_v20 = vld [vmem:[#allocation7 + $0xd0] ss:$8 sps:$4 sm:$0xff]  }
  0x74   : > { %479 = vmatpush1.bf16.msra.mxu0 %v1714_v59  ;;  %v1750_v22 = vld [vmem:[#allocation7 + $0xc4] ss:$8 sps:$4 sm:$0xff]   ;;  %v1748_v23 = vld [vmem:[#allocation7 + $0xc0] ss:$8 sps:$4 sm:$0xff]   ;;  %v1753_v24 = vld [vmem:[#allocation7 + $0xb4] ss:$8 sps:$4 sm:$0xff]  }
  0x75   : > { %957 = vmatprep.subr.bf16.mxu0 %v1717_v58  ;;  %v1751_v25 = vld [vmem:[#allocation7 + $0xb0] ss:$8 sps:$4 sm:$0xff]   ;;  %v1756_v26 = vld [vmem:[#allocation7 + $0xa4] ss:$8 sps:$4 sm:$0xff]   ;;  %v1754_v27 = vld [vmem:[#allocation7 + $0xa0] ss:$8 sps:$4 sm:$0xff]  }
  0x76   : > { %1603 = vmatpush1.bf16.msra.mxu1 %v1721_v2  ;;  %v1762_v30 = vld [vmem:[#allocation7 + $0x84] ss:$8 sps:$4 sm:$0xff]   ;;  %v1760_v31 = vld [vmem:[#allocation7 + $0x80] ss:$8 sps:$4 sm:$0xff]  }
  0x77   : > { %497 = vmatmul.mubr.bf16.vlgmr.msra.gmra.mxu0 %v340_v62  ;;  %1588 = vmatprep.subr.bf16.mxu1 %v1726_v3  ;;  %v372_v36 = vld [vmem:[%s2861_s2] sm:$0x3] }
  0x78   : > { %506 = vmatprep.mubr.bf16.mxu0 %v2176_v0  ;;  %958 = vmatpush1.bf16.msra.mxu0 %v1715_v60 }
  0x79   : > { %959 = vmatprep.subr.bf16.mxu0 %v1720_v61 }
  0x7a   : > { %1604 = vmatpush1.bf16.msra.mxu1 %v1724_v5 }
  0x7b   : > { %1589 = vmatprep.subr.bf16.mxu1 %v1729_v6 }
  0x7c   : > { %960 = vmatpush1.bf16.msra.mxu0 %v1718_v63 }
  0x7d   : > { %961 = vmatprep.subr.bf16.mxu0 %v1723_v1 }
  0x7e   : > { %1605 = vmatpush1.bf16.msra.mxu1 %v1727_v7 }
  0x7f   : > { %507 = vmatmul.mubr.bf16.gmra.mxu0 %v341_v4  ;;  %1590 = vmatprep.subr.bf16.mxu1 %v1732_v8 }
  0x80   : > { %516 = vmatprep.mubr.bf16.mxu0 %v2176_v0  ;;  %962 = vmatpush1.bf16.msra.mxu0 %v1721_v2 }
  0x81   : > { %963 = vmatprep.subr.bf16.mxu0 %v1726_v3 }
  0x82   : > { %1606 = vmatpush1.bf16.msra.mxu1 %v1730_v10 }
  0x83   : > { %1591 = vmatprep.subr.bf16.mxu1 %v1735_v11 }
  0x84   : > { %964 = vmatpush1.bf16.msra.mxu0 %v1724_v5 }
  0x85   : > { %965 = vmatprep.subr.bf16.mxu0 %v1729_v6 }
  0x86   : > { %1607 = vmatpush1.bf16.msra.mxu1 %v1733_v12 }
  0x87   : > { %517 = vmatmul.mubr.bf16.gmra.mxu0 %v342_v9  ;;  %1592 = vmatprep.subr.bf16.mxu1 %v1738_v13 }
  0x88   : > { %526 = vmatprep.mubr.bf16.mxu0 %v2176_v0  ;;  %966 = vmatpush1.bf16.msra.mxu0 %v1727_v7 }
  0x89   : > { %967 = vmatprep.subr.bf16.mxu0 %v1732_v8 }
  0x8a   : > { %1608 = vmatpush1.bf16.msra.mxu1 %v1736_v14 }
  0x8b   : > { %1593 = vmatprep.subr.bf16.mxu1 %v1741_v15 }
  0x8c   : > { %968 = vmatpush1.bf16.msra.mxu0 %v1730_v10 }
  0x8d   : > { %969 = vmatprep.subr.bf16.mxu0 %v1735_v11 }
  0x8e   : > { %1609 = vmatpush2.bf16.msra.mxu1 %v1739_v21 }
  0x8f   : > { %527 = vmatmul.mubr.bf16.gmra.mxu0 %v343_v17  ;;  %1594 = vmatprep.subr.bf16.mxu1 %v1744_v33 }
  0x90   : > { %536 = vmatprep.mubr.bf16.mxu0 %v2176_v0  ;;  %970 = vmatpush1.bf16.msra.mxu0 %v1733_v12 }
  0x91   : > { %971 = vmatprep.subr.bf16.mxu0 %v1738_v13 }
  0x92   : > { %1610 = vmatpush2.bf16.msra.mxu1 %v1742_v16 }
  0x93   : > { %1595 = vmatprep.subr.bf16.mxu1 %v1747_v19 }
  0x94   : > { %972 = vmatpush1.bf16.msra.mxu0 %v1736_v14 }
  0x95   : > { %973 = vmatprep.subr.bf16.mxu0 %v1741_v15 }
  0x96   : > { %1611 = vmatpush2.bf16.msra.mxu1 %v1745_v20 }
  0x97   : > { %537 = vmatmul.mubr.bf16.gmra.mxu0 %v344_v38  ;;  %1596 = vmatprep.subr.bf16.mxu1 %v1750_v22 }
  0x98   : > { %546 = vmatprep.mubr.bf16.mxu0 %v2176_v0  ;;  %974 = vmatpush2.bf16.msra.mxu0 %v1739_v21 }
  0x99   : > { %975 = vmatprep.subr.bf16.mxu0 %v1744_v33 }
  0x9a   : > { %1612 = vmatpush2.bf16.msra.mxu1 %v1748_v23 }
  0x9b   : > { %1597 = vmatprep.subr.bf16.mxu1 %v1753_v24 }
  0x9c   : > { %976 = vmatpush2.bf16.msra.mxu0 %v1742_v16 }
  0x9d   : > { %977 = vmatprep.subr.bf16.mxu0 %v1747_v19 }
  0x9e   : > { %1613 = vmatpush2.bf16.msra.mxu1 %v1751_v25 }
  0x9f   : > { %547 = vmatmul.mubr.bf16.gmra.mxu0 %v345_v18  ;;  %1598 = vmatprep.subr.bf16.mxu1 %v1756_v26 }
  0xa0   : > { %556 = vmatprep.mubr.bf16.mxu0 %v2176_v0  ;;  %978 = vmatpush2.bf16.msra.mxu0 %v1745_v20 }
  0xa1   : > { %979 = vmatprep.subr.bf16.mxu0 %v1750_v22 }
  0xa2   : > { %1614 = vmatpush2.bf16.msra.mxu1 %v1754_v27 }
  0xa4   : > { %980 = vmatpush2.bf16.msra.mxu0 %v1748_v23 }
  0xa5   : > { %981 = vmatprep.subr.bf16.mxu0 %v1753_v24 }
  0xa7   : > { %557 = vmatmul.mubr.bf16.gmra.mxu0 %v346_v28  ;;  %v1759_v28 = vld [vmem:[#allocation7 + $0x94] ss:$8 sps:$4 sm:$0xff]  }
  0xa8   : > { %566 = vmatprep.mubr.bf16.mxu0 %v2176_v0  ;;  %982 = vmatpush2.bf16.msra.mxu0 %v1751_v25 }
  0xa9   : > { %983 = vmatprep.subr.bf16.mxu0 %v1756_v26  ;;  %1599 = vmatprep.subr.bf16.mxu1 %v1759_v28 }
  0xac   : > { %984 = vmatpush2.bf16.msra.mxu0 %v1754_v27 }
  0xad   : > { %985 = vmatprep.subr.bf16.mxu0 %v1759_v28 }
  0xaf   : > { %567 = vmatmul.mubr.bf16.gmra.mxu0 %v347_v29  ;;  %v1757_v29 = vld [vmem:[#allocation7 + $0x90] ss:$8 sps:$4 sm:$0xff]  }
  0xb0   : > { %576 = vmatprep.mubr.bf16.mxu0 %v2176_v0  ;;  %986 = vmatpush2.bf16.msra.mxu0 %v1757_v29 }
  0xb1   : > { %1615 = vmatpush2.bf16.msra.mxu1 %v1757_v29  ;;  %987 = vmatprep.subr.bf16.mxu0 %v1762_v30 }
  0xb2   : > { %1600 = vmatprep.subr.bf16.mxu1 %v1762_v30 }
  0xb4   : > { %988 = vmatpush2.bf16.msra.mxu0 %v1760_v31 }
  0xb5   : > { %1616 = vmatpush2.bf16.msra.mxu1 %v1760_v31 }
  0xb7   : > { %577 = vmatmul.mubr.bf16.gmra.mxu0 %v348_v34  ;;  %v2591_v34 = vshrl.u32 %v374_v32, 7 }
  0xb8   : > { %586 = vmatprep.mubr.bf16.mxu0 %v2176_v0 }
  0xb9   : > { %v380_v35 = vsub.s32 1, %v2591_v34  ;;  %v376_v37 = vsub.s32 0, %v2591_v34 }
  0xbf   : > { %587 = vmatmul.mubr.bf16.gmra.mxu0 %v349_v39  ;;  %v2600_v39 = vrot.slane %v372_v36, %v380_v35 }
  0xc0   : > { %596 = vmatprep.mubr.bf16.mxu0 %v2176_v0 }
  0xc7   : > { %597 = vmatmul.mubr.bf16.gmra.mxu0 %v350_v40  ;;  %v2604_v40 = vrot.slane %v372_v36, %v376_v37 }
  0xc8   : > { %606 = vmatprep.mubr.bf16.mxu0 %v2176_v0 }
  0xcf   : > { %607 = vmatmul.mubr.bf16.gmra.mxu0 %v351_v44 }
  0xd0   : > { %616 = vmatprep.mubr.bf16.mxu0 %v2176_v0 }
  0xd7   : > { %617 = vmatmul.mubr.bf16.gmra.mxu0 %v352_v48 }
  0xd8   : > { %626 = vmatprep.mubr.bf16.mxu0 %v2176_v0 }
  0xdf   : > { %627 = vmatmul.mubr.bf16.gmra.mxu0 %v353_v49 }
  0xe0   : > { %636 = vmatprep.mubr.bf16.mxu0 %v2176_v0 }
  0xe7   : > { %637 = vmatmul.mubr.bf16.gmra.mxu0 %v354_v54 }
  0xe8   : > { %646 = vmatprep.mubr.bf16.mxu0 %v2176_v0 }
  0xef   : > { %647 = vmatmul.mubr.bf16.gmra.mxu0 %v355_v57 }
 0x137   : > { %v498_v0 = vpop.f32.mrf.mxu0 }
 0x138   : > { %v499_v45 = vadd.f32 %v498_v0, %v2604_v40 }
 0x139   : > { %v500_v41 = vpop.f32.mrf.mxu0 }
 0x13a   : > { %v501_v42 = vadd.f32 %v500_v41, %v2600_v39 }
 0x13b   : > { %v502_v43 = vpop.f32.mrf.mxu0 }
 0x13c   : > { %v503_v44 = vadd.f32 %v502_v43, %v2604_v40  ;;  %1763 = vtanh.f32 %v501_v42 }
 0x13d   : > { %v504_v46 = vpop.f32.mrf.mxu0 }
 0x13e   : > { %v505_v47 = vadd.f32 %v504_v46, %v2600_v39  ;;  %1765 = vtanh.f32 %v503_v44 }
 0x13f   : > { %v508_v48 = vpop.f32.mrf.mxu0 }
 0x140   : > { %1767 = vtanh.f32 %v505_v47  ;;  %v509_v53 = vadd.f32 %v508_v48, %v2604_v40 }
 0x141   : > { %1769 = vtanh.f32 %v499_v45  ;;  %v510_v49 = vpop.f32.mrf.mxu0 }
 0x142   : > { %v511_v50 = vadd.f32 %v510_v49, %v2600_v39 }
 0x143   : > { %v512_v51 = vpop.f32.mrf.mxu0 }
 0x144   : > { %v513_v52 = vadd.f32 %v512_v51, %v2604_v40  ;;  %1771 = vtanh.f32 %v511_v50 }
 0x145   : > { %v514_v54 = vpop.f32.mrf.mxu0 }
 0x146   : > { %v515_v55 = vadd.f32 %v514_v54, %v2600_v39  ;;  %1773 = vtanh.f32 %v513_v52 }
 0x147   : > { %v518_v56 = vpop.f32.mrf.mxu0 }
 0x148   : > { %1775 = vtanh.f32 %v515_v55  ;;  %v519_v1 = vadd.f32 %v518_v56, %v2604_v40 }
 0x149   : > { %1777 = vtanh.f32 %v509_v53  ;;  %v520_v57 = vpop.f32.mrf.mxu0  ;;  %v1764_v59 = vpop.eup %1763 }
 0x14a   : > { %v521_v58 = vadd.f32 %v520_v57, %v2600_v39 }
 0x14b   : > { %v522_v60 = vpop.f32.mrf.mxu0  ;;  %v1766_v61 = vpop.eup %1765 }
 0x14c   : > { %v523_v62 = vadd.f32 %v522_v60, %v2604_v40  ;;  %1779 = vtanh.f32 %v521_v58 }
 0x14d   : > { %v1768_v63 = vpop.eup %1767  ;;  %v524_v2 = vpop.f32.mrf.mxu0 }
 0x14e   : > { %v1770_v3 = vpop.eup %1769  ;;  %v525_v4 = vadd.f32 %v524_v2, %v2600_v39  ;;  %v722_v5 = vpack.c.bf16 %v1768_v63, %v1764_v59  ;;  %1781 = vtanh.f32 %v523_v62 }
 0x14f   : > { %v528_v6 = vpop.f32.mrf.mxu0  ;;  %v721_v7 = vpack.c.bf16 %v1766_v61, %v1770_v3 }
 0x150   : > { %1783 = vtanh.f32 %v525_v4  ;;  %989 = vmatprep.mubr.bf16.mxu0 %v722_v5  ;;  %v529_v14 = vadd.f32 %v528_v6, %v2604_v40 }
 0x151   : > { %1785 = vtanh.f32 %v519_v1  ;;  %v530_v8 = vpop.f32.mrf.mxu0  ;;  %990 = vmatmul.mubr.bf16.vlgmr.msra.gmra.mxu0 %v721_v7  ;;  %v1772_v10 = vpop.eup %1771 }
 0x152   : > { %v531_v9 = vadd.f32 %v530_v8, %v2600_v39 }
 0x153   : > { %v532_v11 = vpop.f32.mrf.mxu0  ;;  %v1774_v12 = vpop.eup %1773 }
 0x154   : > { %v533_v13 = vadd.f32 %v532_v11, %v2604_v40  ;;  %1787 = vtanh.f32 %v531_v9 }
 0x155   : > { %v1776_v17 = vpop.eup %1775  ;;  %v534_v15 = vpop.f32.mrf.mxu0 }
 0x156   : > { %v1778_v21 = vpop.eup %1777  ;;  %v535_v33 = vadd.f32 %v534_v15, %v2600_v39  ;;  %v724_v38 = vpack.c.bf16 %v1776_v17, %v1772_v10  ;;  %1789 = vtanh.f32 %v533_v13 }
 0x157   : > { %v538_v16 = vpop.f32.mrf.mxu0  ;;  %v723_v18 = vpack.c.bf16 %v1774_v12, %v1778_v21 }
 0x158   : > { %1791 = vtanh.f32 %v535_v33  ;;  %999 = vmatprep.mubr.bf16.mxu0 %v724_v38  ;;  %v539_v27 = vadd.f32 %v538_v16, %v2604_v40 }
 0x159   : > { %1793 = vtanh.f32 %v529_v14  ;;  %v540_v19 = vpop.f32.mrf.mxu0  ;;  %1000 = vmatmul.mubr.bf16.gmra.mxu0 %v723_v18  ;;  %v1780_v22 = vpop.eup %1779 }
 0x15a   : > { %v541_v20 = vadd.f32 %v540_v19, %v2600_v39 }
 0x15b   : > { %v542_v23 = vpop.f32.mrf.mxu0  ;;  %v1782_v24 = vpop.eup %1781 }
 0x15c   : > { %v543_v25 = vadd.f32 %v542_v23, %v2604_v40  ;;  %1795 = vtanh.f32 %v541_v20 }
 0x15d   : > { %v1784_v26 = vpop.eup %1783  ;;  %v544_v28 = vpop.f32.mrf.mxu0 }
 0x15e   : > { %v1786_v29 = vpop.eup %1785  ;;  %v545_v30 = vadd.f32 %v544_v28, %v2600_v39  ;;  %v726_v31 = vpack.c.bf16 %v1784_v26, %v1780_v22  ;;  %1797 = vtanh.f32 %v543_v25 }
 0x15f   : > { %v548_v32 = vpop.f32.mrf.mxu0  ;;  %v725_v36 = vpack.c.bf16 %v1782_v24, %v1786_v29 }
 0x160   : > { %1799 = vtanh.f32 %v545_v30  ;;  %1009 = vmatprep.mubr.bf16.mxu1 %v726_v31  ;;  %v549_v47 = vadd.f32 %v548_v32, %v2604_v40 }
 0x161   : > { %1801 = vtanh.f32 %v539_v27  ;;  %v550_v0 = vpop.f32.mrf.mxu0  ;;  %1010 = vmatmul.mubr.bf16.vlgmr.msra.gmra.mxu1 %v725_v36  ;;  %v1788_v42 = vpop.eup %1787 }
 0x162   : > { %v551_v41 = vadd.f32 %v550_v0, %v2600_v39 }
 0x163   : > { %v552_v43 = vpop.f32.mrf.mxu0  ;;  %v1790_v44 = vpop.eup %1789 }
 0x164   : > { %v553_v45 = vadd.f32 %v552_v43, %v2604_v40  ;;  %1803 = vtanh.f32 %v551_v41 }
 0x165   : > { %v1792_v46 = vpop.eup %1791  ;;  %v554_v48 = vpop.f32.mrf.mxu0 }
 0x166   : > { %v1794_v49 = vpop.eup %1793  ;;  %v555_v50 = vadd.f32 %v554_v48, %v2600_v39  ;;  %v728_v51 = vpack.c.bf16 %v1792_v46, %v1788_v42  ;;  %1805 = vtanh.f32 %v553_v45 }
 0x167   : > { %v558_v52 = vpop.f32.mrf.mxu0  ;;  %v727_v53 = vpack.c.bf16 %v1790_v44, %v1794_v49 }
 0x168   : > { %1807 = vtanh.f32 %v555_v50  ;;  %1019 = vmatprep.mubr.bf16.mxu1 %v728_v51  ;;  %v559_v61 = vadd.f32 %v558_v52, %v2604_v40 }
 0x169   : > { %1809 = vtanh.f32 %v549_v47  ;;  %v560_v54 = vpop.f32.mrf.mxu0  ;;  %1020 = vmatmul.mubr.bf16.gmra.mxu1 %v727_v53  ;;  %v1796_v56 = vpop.eup %1795 }
 0x16a   : > { %v561_v55 = vadd.f32 %v560_v54, %v2600_v39 }
 0x16b   : > { %v562_v57 = vpop.f32.mrf.mxu0  ;;  %v1798_v58 = vpop.eup %1797 }
 0x16c   : > { %v563_v59 = vadd.f32 %v562_v57, %v2604_v40  ;;  %1811 = vtanh.f32 %v561_v55 }
 0x16d   : > { %v1800_v60 = vpop.eup %1799  ;;  %v564_v62 = vpop.f32.mrf.mxu0 }
 0x16e   : > { %v1802_v63 = vpop.eup %1801  ;;  %v565_v1 = vadd.f32 %v564_v62, %v2600_v39  ;;  %v730_v2 = vpack.c.bf16 %v1800_v60, %v1796_v56  ;;  %1813 = vtanh.f32 %v563_v59 }
 0x16f   : > { %v568_v3 = vpop.f32.mrf.mxu0  ;;  %v729_v4 = vpack.c.bf16 %v1798_v58, %v1802_v63 }
 0x170   : > { %1815 = vtanh.f32 %v565_v1  ;;  %1029 = vmatprep.mubr.bf16.mxu1 %v730_v2  ;;  %v569_v12 = vadd.f32 %v568_v3, %v2604_v40 }
 0x171   : > { %1817 = vtanh.f32 %v559_v61  ;;  %v570_v5 = vpop.f32.mrf.mxu0  ;;  %1030 = vmatmul.mubr.bf16.gmra.mxu1 %v729_v4  ;;  %v1804_v7 = vpop.eup %1803 }
 0x172   : > { %v571_v6 = vadd.f32 %v570_v5, %v2600_v39 }
 0x173   : > { %v572_v8 = vpop.f32.mrf.mxu0  ;;  %v1806_v9 = vpop.eup %1805 }
 0x174   : > { %v573_v10 = vadd.f32 %v572_v8, %v2604_v40  ;;  %1819 = vtanh.f32 %v571_v6 }
 0x175   : > { %v1808_v11 = vpop.eup %1807  ;;  %v574_v13 = vpop.f32.mrf.mxu0 }
 0x176   : > { %v1810_v17 = vpop.eup %1809  ;;  %v575_v14 = vadd.f32 %v574_v13, %v2600_v39  ;;  %v732_v15 = vpack.c.bf16 %v1808_v11, %v1804_v7  ;;  %1821 = vtanh.f32 %v573_v10 }
 0x177   : > { %v578_v21 = vpop.f32.mrf.mxu0  ;;  %v731_v33 = vpack.c.bf16 %v1806_v9, %v1810_v17 }
 0x178   : > { %1823 = vtanh.f32 %v575_v14  ;;  %1039 = vmatprep.mubr.bf16.mxu1 %v732_v15  ;;  %v579_v24 = vadd.f32 %v578_v21, %v2604_v40 }
 0x179   : > { %1825 = vtanh.f32 %v569_v12  ;;  %v580_v38 = vpop.f32.mrf.mxu0  ;;  %1040 = vmatmul.mubr.bf16.gmra.mxu1 %v731_v33  ;;  %v1812_v18 = vpop.eup %1811 }
 0x17a   : > { %v581_v16 = vadd.f32 %v580_v38, %v2600_v39 }
 0x17b   : > { %v582_v19 = vpop.f32.mrf.mxu0  ;;  %v1814_v20 = vpop.eup %1813 }
 0x17c   : > { %v583_v22 = vadd.f32 %v582_v19, %v2604_v40  ;;  %1827 = vtanh.f32 %v581_v16 }
 0x17d   : > { %v1816_v23 = vpop.eup %1815  ;;  %v584_v25 = vpop.f32.mrf.mxu0 }
 0x17e   : > { %v1818_v26 = vpop.eup %1817  ;;  %v585_v27 = vadd.f32 %v584_v25, %v2600_v39  ;;  %v734_v28 = vpack.c.bf16 %v1816_v23, %v1812_v18  ;;  %1829 = vtanh.f32 %v583_v22 }
 0x17f   : > { %v588_v29 = vpop.f32.mrf.mxu0  ;;  %v733_v30 = vpack.c.bf16 %v1814_v20, %v1818_v26 }
 0x180   : > { %1831 = vtanh.f32 %v585_v27  ;;  %1049 = vmatprep.mubr.bf16.mxu1 %v734_v28  ;;  %v589_v44 = vadd.f32 %v588_v29, %v2604_v40 }
 0x181   : > { %1833 = vtanh.f32 %v579_v24  ;;  %v590_v31 = vpop.f32.mrf.mxu0  ;;  %1050 = vmatmul.mubr.bf16.gmra.mxu1 %v733_v30  ;;  %v1820_v36 = vpop.eup %1819 }
 0x182   : > { %v591_v32 = vadd.f32 %v590_v31, %v2600_v39 }
 0x183   : > { %v592_v0 = vpop.f32.mrf.mxu0  ;;  %v1822_v41 = vpop.eup %1821 }
 0x184   : > { %v593_v42 = vadd.f32 %v592_v0, %v2604_v40  ;;  %1835 = vtanh.f32 %v591_v32 }
 0x185   : > { %v1824_v43 = vpop.eup %1823  ;;  %v594_v45 = vpop.f32.mrf.mxu0 }
 0x186   : > { %v1826_v46 = vpop.eup %1825  ;;  %v595_v47 = vadd.f32 %v594_v45, %v2600_v39  ;;  %v736_v48 = vpack.c.bf16 %v1824_v43, %v1820_v36  ;;  %1837 = vtanh.f32 %v593_v42 }
 0x187   : > { %v598_v49 = vpop.f32.mrf.mxu0  ;;  %v735_v50 = vpack.c.bf16 %v1822_v41, %v1826_v46 }
 0x188   : > { %1839 = vtanh.f32 %v595_v47  ;;  %1059 = vmatprep.mubr.bf16.mxu1 %v736_v48  ;;  %v599_v58 = vadd.f32 %v598_v49, %v2604_v40 }
 0x189   : > { %1841 = vtanh.f32 %v589_v44  ;;  %v600_v51 = vpop.f32.mrf.mxu0  ;;  %1060 = vmatmul.mubr.bf16.gmra.mxu1 %v735_v50  ;;  %v1828_v53 = vpop.eup %1827 }
 0x18a   : > { %v601_v52 = vadd.f32 %v600_v51, %v2600_v39 }
 0x18b   : > { %v602_v54 = vpop.f32.mrf.mxu0  ;;  %v1830_v55 = vpop.eup %1829 }
 0x18c   : > { %v603_v56 = vadd.f32 %v602_v54, %v2604_v40  ;;  %1843 = vtanh.f32 %v601_v52 }
 0x18d   : > { %v1832_v57 = vpop.eup %1831  ;;  %v604_v59 = vpop.f32.mrf.mxu0 }
 0x18e   : > { %v1834_v60 = vpop.eup %1833  ;;  %v605_v61 = vadd.f32 %v604_v59, %v2600_v39  ;;  %v738_v62 = vpack.c.bf16 %v1832_v57, %v1828_v53  ;;  %1845 = vtanh.f32 %v603_v56 }
 0x18f   : > { %v608_v63 = vpop.f32.mrf.mxu0  ;;  %v737_v1 = vpack.c.bf16 %v1830_v55, %v1834_v60 }
 0x190   : > { %1847 = vtanh.f32 %v605_v61  ;;  %1069 = vmatprep.mubr.bf16.mxu1 %v738_v62  ;;  %v609_v9 = vadd.f32 %v608_v63, %v2604_v40 }
 0x191   : > { %1849 = vtanh.f32 %v599_v58  ;;  %v610_v2 = vpop.f32.mrf.mxu0  ;;  %1070 = vmatmul.mubr.bf16.gmra.mxu1 %v737_v1  ;;  %v1836_v4 = vpop.eup %1835 }
 0x192   : > { %v611_v3 = vadd.f32 %v610_v2, %v2600_v39 }
 0x193   : > { %v612_v5 = vpop.f32.mrf.mxu0  ;;  %v1838_v6 = vpop.eup %1837 }
 0x194   : > { %v613_v7 = vadd.f32 %v612_v5, %v2604_v40  ;;  %1851 = vtanh.f32 %v611_v3 }
 0x195   : > { %v1840_v8 = vpop.eup %1839  ;;  %v614_v10 = vpop.f32.mrf.mxu0 }
 0x196   : > { %v1842_v11 = vpop.eup %1841  ;;  %v615_v12 = vadd.f32 %v614_v10, %v2600_v39  ;;  %v740_v13 = vpack.c.bf16 %v1840_v8, %v1836_v4  ;;  %1853 = vtanh.f32 %v613_v7 }
 0x197   : > { %v618_v17 = vpop.f32.mrf.mxu0  ;;  %v739_v14 = vpack.c.bf16 %v1838_v6, %v1842_v11 }
 0x198   : > { %1855 = vtanh.f32 %v615_v12  ;;  %1079 = vmatprep.mubr.bf16.mxu1 %v740_v13  ;;  %v619_v20 = vadd.f32 %v618_v17, %v2604_v40 }
 0x199   : > { %1857 = vtanh.f32 %v609_v9  ;;  %v620_v15 = vpop.f32.mrf.mxu0  ;;  %1080 = vmatmul.mubr.bf16.gmra.mxu1 %v739_v14  ;;  %v1844_v33 = vpop.eup %1843 }
 0x19a   : > { %v621_v21 = vadd.f32 %v620_v15, %v2600_v39 }
 0x19b   : > { %v622_v38 = vpop.f32.mrf.mxu0  ;;  %v1846_v16 = vpop.eup %1845 }
 0x19c   : > { %v623_v18 = vadd.f32 %v622_v38, %v2604_v40  ;;  %1859 = vtanh.f32 %v621_v21 }
 0x19d   : > { %v1848_v19 = vpop.eup %1847  ;;  %v624_v22 = vpop.f32.mrf.mxu0 }
 0x19e   : > { %v1850_v23 = vpop.eup %1849  ;;  %v625_v24 = vadd.f32 %v624_v22, %v2600_v39  ;;  %v742_v25 = vpack.c.bf16 %v1848_v19, %v1844_v33  ;;  %1861 = vtanh.f32 %v623_v18  ;;  %v785_v19 = vld [vmem:[%s2863_s4] sm:$0x3] }
 0x19f   : > { %v628_v26 = vpop.f32.mrf.mxu0  ;;  %v741_v27 = vpack.c.bf16 %v1846_v16, %v1850_v23  ;;  %v2679_v22 = vrot.slane %v785_v19, %v380_v35 }
 0x1a0   : > { %1863 = vtanh.f32 %v625_v24  ;;  %1089 = vmatprep.mubr.bf16.mxu1 %v742_v25  ;;  %v629_v41 = vadd.f32 %v628_v26, %v2604_v40 }
 0x1a1   : > { %1865 = vtanh.f32 %v619_v20  ;;  %v630_v28 = vpop.f32.mrf.mxu0  ;;  %1090 = vmatmul.mubr.bf16.gmra.mxu1 %v741_v27  ;;  %v1852_v30 = vpop.eup %1851  ;;  %v2675_v20 = vrot.slane %v785_v19, %v376_v37 }
 0x1a2   : > { %v631_v29 = vadd.f32 %v630_v28, %v2600_v39 }
 0x1a3   : > { %v632_v31 = vpop.f32.mrf.mxu0  ;;  %v1854_v32 = vpop.eup %1853 }
 0x1a4   : > { %v633_v36 = vadd.f32 %v632_v31, %v2604_v40  ;;  %1867 = vtanh.f32 %v631_v29 }
 0x1a5   : > { %v1856_v0 = vpop.eup %1855  ;;  %v634_v42 = vpop.f32.mrf.mxu0 }
 0x1a6   : > { %v1858_v43 = vpop.eup %1857  ;;  %v635_v44 = vadd.f32 %v634_v42, %v2600_v39  ;;  %v744_v45 = vpack.c.bf16 %v1856_v0, %v1852_v30  ;;  %1869 = vtanh.f32 %v633_v36 }
 0x1a7   : > { %v638_v46 = vpop.f32.mrf.mxu0  ;;  %v743_v47 = vpack.c.bf16 %v1854_v32, %v1858_v43  ;;  %v308_v43 = vld [vmem:[%s2341_s30 + $0x8] sm:$0xff] }
 0x1a8   : > { %1871 = vtanh.f32 %v635_v44  ;;  %1099 = vmatprep.mubr.bf16.mxu1 %v744_v45  ;;  %v639_v55 = vadd.f32 %v638_v46, %v2604_v40 }
 0x1a9   : > { %1873 = vtanh.f32 %v629_v41  ;;  %v640_v48 = vpop.f32.mrf.mxu0  ;;  %1100 = vmatmul.mubr.bf16.gmra.mxu1 %v743_v47  ;;  %v1860_v50 = vpop.eup %1859 }
 0x1aa   : > { %v641_v49 = vadd.f32 %v640_v48, %v2600_v39 }
 0x1ab   : > { %v642_v51 = vpop.f32.mrf.mxu0  ;;  %v1862_v52 = vpop.eup %1861 }
 0x1ac   : > { %v643_v53 = vadd.f32 %v642_v51, %v2604_v40  ;;  %1875 = vtanh.f32 %v641_v49 }
 0x1ad   : > { %v1864_v54 = vpop.eup %1863  ;;  %v644_v56 = vpop.f32.mrf.mxu0 }
 0x1ae   : > { %v1866_v57 = vpop.eup %1865  ;;  %v645_v58 = vadd.f32 %v644_v56, %v2600_v39  ;;  %v746_v59 = vpack.c.bf16 %v1864_v54, %v1860_v50  ;;  %1877 = vtanh.f32 %v643_v53 }
 0x1af   : > { %v648_v60 = vpop.f32.mrf.mxu0  ;;  %v745_v61 = vpack.c.bf16 %v1862_v52, %v1866_v57  ;;  %v309_v52 = vld [vmem:[%s2341_s30 + $0x18] sm:$0xff] }
 0x1b0   : > { %1879 = vtanh.f32 %v645_v58  ;;  %1109 = vmatprep.mubr.bf16.mxu1 %v746_v59  ;;  %v649_v6 = vadd.f32 %v648_v60, %v2604_v40 }
 0x1b1   : > { %1881 = vtanh.f32 %v639_v55  ;;  %v650_v62 = vpop.f32.mrf.mxu0  ;;  %1110 = vmatmul.mubr.bf16.gmra.mxu1 %v745_v61  ;;  %v1868_v1 = vpop.eup %1867 }
 0x1b2   : > { %v651_v63 = vadd.f32 %v650_v62, %v2600_v39  ;;  %v310_v62 = vld [vmem:[%s2341_s30 + $0x28] sm:$0xff] }
 0x1b3   : > { %v652_v2 = vpop.f32.mrf.mxu0  ;;  %v1870_v3 = vpop.eup %1869 }
 0x1b4   : > { %v653_v4 = vadd.f32 %v652_v2, %v2604_v40  ;;  %1883 = vtanh.f32 %v651_v63 }
 0x1b5   : > { %v1872_v5 = vpop.eup %1871  ;;  %v654_v7 = vpop.f32.mrf.mxu0 }
 0x1b6   : > { %v1874_v8 = vpop.eup %1873  ;;  %v655_v9 = vadd.f32 %v654_v7, %v2600_v39  ;;  %v748_v10 = vpack.c.bf16 %v1872_v5, %v1868_v1  ;;  %1885 = vtanh.f32 %v653_v4 }
 0x1b7   : > { %v747_v11 = vpack.c.bf16 %v1870_v3, %v1874_v8 }
 0x1b8   : > { %1887 = vtanh.f32 %v655_v9  ;;  %1119 = vmatprep.mubr.bf16.mxu1 %v748_v10  ;;  %v311_v9 = vld [vmem:[%s2341_s30 + $0x38] sm:$0xff] }
 0x1b9   : > { %1889 = vtanh.f32 %v649_v6  ;;  %1120 = vmatmul.mubr.bf16.gmra.mxu1 %v747_v11  ;;  %v1876_v12 = vpop.eup %1875 }
 0x1bb   : > { %v1878_v13 = vpop.eup %1877 }
 0x1bd   : > { %v1880_v17 = vpop.eup %1879 }
 0x1be   : > { %v1882_v14 = vpop.eup %1881  ;;  %v750_v15 = vpack.c.bf16 %v1880_v17, %v1876_v12 }
 0x1bf   : > { %v749_v21 = vpack.c.bf16 %v1878_v13, %v1882_v14 }
 0x1c0   : > { %1129 = vmatprep.mubr.bf16.mxu1 %v750_v15 }
 0x1c1   : > { %1130 = vmatmul.mubr.bf16.gmra.mxu1 %v749_v21  ;;  %v1884_v40 = vpop.eup %1883 }
 0x1c3   : > { %v1886_v33 = vpop.eup %1885 }
 0x1c5   : > { %v1888_v38 = vpop.eup %1887 }
 0x1c6   : > { %v1890_v16 = vpop.eup %1889  ;;  %v752_v39 = vpack.c.bf16 %v1888_v38, %v1884_v40 }
 0x1c7   : > { %v751_v18 = vpack.c.bf16 %v1886_v33, %v1890_v16  ;;  %v312_v33 = vld [vmem:[%s2341_s30 + $0x48] sm:$0xff] }
 0x1c8   : > { %1139 = vmatprep.mubr.bf16.mxu1 %v752_v39 }
 0x1c9   : > { %1140 = vmatmul.mubr.bf16.gmra.mxu1 %v751_v18 }
 0x211   : > { %v991_v23 = vpop.f32.mrf.mxu0 }
 0x212   : > { %v992_v24 = vadd.f32 %v991_v23, %v2675_v20 }
 0x213   : > { %v993_v25 = vpop.f32.mrf.mxu0 }
 0x214   : > { %1891 = vtanh.f32 %v992_v24  ;;  %v994_v26 = vadd.f32 %v993_v25, %v2679_v22 }
 0x215   : > { %v995_v27 = vpop.f32.mrf.mxu0 }
 0x216   : > { %v996_v28 = vadd.f32 %v995_v27, %v2675_v20  ;;  %1893 = vtanh.f32 %v994_v26  ;;  %v313_v27 = vld [vmem:[%s2341_s30 + $0x58] sm:$0xff] }
 0x217   : > { %v997_v29 = vpop.f32.mrf.mxu0 }
 0x218   : > { %1895 = vtanh.f32 %v996_v28  ;;  %v998_v37 = vadd.f32 %v997_v29, %v2679_v22 }
 0x219   : > { %v1001_v30 = vpop.f32.mrf.mxu0 }
 0x21a   : > { %v1002_v34 = vadd.f32 %v1001_v30, %v2675_v20  ;;  %1897 = vtanh.f32 %v998_v37 }
 0x21b   : > { %v1003_v35 = vpop.f32.mrf.mxu0 }
 0x21c   : > { %1899 = vtanh.f32 %v1002_v34  ;;  %v1004_v31 = vadd.f32 %v1003_v35, %v2679_v22 }
 0x21d   : > { %v1005_v32 = vpop.f32.mrf.mxu0 }
 0x21e   : > { %v1006_v36 = vadd.f32 %v1005_v32, %v2675_v20  ;;  %1901 = vtanh.f32 %v1004_v31 }
 0x21f   : > { %v1007_v0 = vpop.f32.mrf.mxu0 }
 0x220   : > { %1903 = vtanh.f32 %v1006_v36  ;;  %v1008_v41 = vadd.f32 %v1007_v0, %v2679_v22  ;;  %v314_v0 = vld [vmem:[%s2341_s30 + $0x68] sm:$0xff] }
 0x221   : > { %v1892_v42 = vpop.eup %1891  ;;  %v1011_v44 = vpop.f32.mrf.mxu1 }
 0x222   : > { %vm1214_vm0 = vcmp.lt.f32.partialorder %v1892_v42, 0.0  ;;  %v1012_v45 = vadd.f32 %v1011_v44, %v2675_v20  ;;  %1905 = vtanh.f32 %v1008_v41 }
 0x223   : > { %v1246_v46 = vsel %vm1214_vm0, nan, %v1892_v42  ;;  %v1013_v47 = vpop.f32.mrf.mxu1  ;;  %v1894_v48 = vpop.eup %1893 }
 0x224   : > { %v1278_v49 = vmul.f32 %v1246_v46, %v308_v43  ;;  %1907 = vtanh.f32 %v1012_v45  ;;  %v1014_v50 = vadd.f32 %v1013_v47, %v2679_v22 }
 0x225   : > { %v1896_v51 = vpop.eup %1895  ;;  %v1015_v53 = vpop.f32.mrf.mxu1 }
 0x226   : > { %v1310_v54 = vadd.f32 %v1894_v48, %v1278_v49  ;;  %vm1215_vm1 = vcmp.lt.f32.partialorder %v1896_v51, 0.0  ;;  %v1016_v55 = vadd.f32 %v1015_v53, %v2675_v20  ;;  %1909 = vtanh.f32 %v1014_v50  ;;  %v315_v50 = vld [vmem:[%s2341_s30 + $0x78] sm:$0xff] }
 0x227   : > { %v1247_v56 = vsel %vm1215_vm1, nan, %v1896_v51  ;;  %v1017_v57 = vpop.f32.mrf.mxu1  ;;  %v1898_v58 = vpop.eup %1897 }
 0x228   : > { %1374 = vst [vmem:[%s2358_s24 + $0x8] sm:$0xff] %v1310_v54  ;;  %v1279_v59 = vmul.f32 %v1247_v56, %v309_v52  ;;  %1911 = vtanh.f32 %v1016_v55  ;;  %v1018_v60 = vadd.f32 %v1017_v57, %v2679_v22 }
 0x229   : > { %v1900_v61 = vpop.eup %1899  ;;  %v1021_v63 = vpop.f32.mrf.mxu1 }
 0x22a   : > { %v1311_v1 = vadd.f32 %v1898_v58, %v1279_v59  ;;  %vm1216_vm2 = vcmp.lt.f32.partialorder %v1900_v61, 0.0  ;;  %v1022_v2 = vadd.f32 %v1021_v63, %v2675_v20  ;;  %1913 = vtanh.f32 %v1018_v60  ;;  %v316_v60 = vld [vmem:[%s2341_s30 + $0x88] sm:$0xff] }
 0x22b   : > { %v1248_v3 = vsel %vm1216_vm2, nan, %v1900_v61  ;;  %v1023_v4 = vpop.f32.mrf.mxu1  ;;  %v1902_v5 = vpop.eup %1901 }
 0x22c   : > { %1375 = vst [vmem:[%s2358_s24 + $0x18] sm:$0xff] %v1311_v1  ;;  %v1280_v6 = vmul.f32 %v1248_v3, %v310_v62  ;;  %1915 = vtanh.f32 %v1022_v2  ;;  %v1024_v7 = vadd.f32 %v1023_v4, %v2679_v22 }
 0x22d   : > { %v1904_v8 = vpop.eup %1903  ;;  %v1025_v10 = vpop.f32.mrf.mxu1 }
 0x22e   : > { %v1312_v11 = vadd.f32 %v1902_v5, %v1280_v6  ;;  %vm1217_vm3 = vcmp.lt.f32.partialorder %v1904_v8, 0.0  ;;  %v1026_v12 = vadd.f32 %v1025_v10, %v2675_v20  ;;  %1917 = vtanh.f32 %v1024_v7  ;;  %v317_v7 = vld [vmem:[%s2341_s30 + $0x98] sm:$0xff] }
 0x22f   : > { %v1249_v13 = vsel %vm1217_vm3, nan, %v1904_v8  ;;  %v1027_v17 = vpop.f32.mrf.mxu1  ;;  %v1906_v14 = vpop.eup %1905 }
 0x230   : > { %1376 = vst [vmem:[%s2358_s24 + $0x28] sm:$0xff] %v1312_v11  ;;  %v1281_v15 = vmul.f32 %v1249_v13, %v311_v9  ;;  %1919 = vtanh.f32 %v1026_v12  ;;  %v1028_v21 = vadd.f32 %v1027_v17, %v2679_v22 }
 0x231   : > { %v1908_v40 = vpop.eup %1907  ;;  %v1031_v38 = vpop.f32.mrf.mxu1 }
 0x232   : > { %v1313_v16 = vadd.f32 %v1906_v14, %v1281_v15  ;;  %vm1218_vm4 = vcmp.lt.f32.partialorder %v1908_v40, 0.0  ;;  %v1032_v39 = vadd.f32 %v1031_v38, %v2675_v20  ;;  %1921 = vtanh.f32 %v1028_v21  ;;  %v318_v21 = vld [vmem:[%s2341_s30 + $0xa8] sm:$0xff] }
 0x233   : > { %v1250_v18 = vsel %vm1218_vm4, nan, %v1908_v40  ;;  %v1033_v19 = vpop.f32.mrf.mxu1  ;;  %v1910_v23 = vpop.eup %1909 }
 0x234   : > { %1377 = vst [vmem:[%s2358_s24 + $0x38] sm:$0xff] %v1313_v16  ;;  %v1282_v24 = vmul.f32 %v1250_v18, %v312_v33  ;;  %1923 = vtanh.f32 %v1032_v39  ;;  %v1034_v25 = vadd.f32 %v1033_v19, %v2679_v22 }
 0x235   : > { %v1912_v26 = vpop.eup %1911  ;;  %v1035_v28 = vpop.f32.mrf.mxu1 }
 0x236   : > { %v1314_v29 = vadd.f32 %v1910_v23, %v1282_v24  ;;  %vm1219_vm5 = vcmp.lt.f32.partialorder %v1912_v26, 0.0  ;;  %v1036_v37 = vadd.f32 %v1035_v28, %v2675_v20  ;;  %1925 = vtanh.f32 %v1034_v25  ;;  %v319_v25 = vld [vmem:[%s2341_s30 + $0xb8] sm:$0xff] }
 0x237   : > { %v1251_v30 = vsel %vm1219_vm5, nan, %v1912_v26  ;;  %v1037_v34 = vpop.f32.mrf.mxu1  ;;  %v1914_v35 = vpop.eup %1913 }
 0x238   : > { %1378 = vst [vmem:[%s2358_s24 + $0x48] sm:$0xff] %v1314_v29  ;;  %v1283_v31 = vmul.f32 %v1251_v30, %v313_v27  ;;  %1927 = vtanh.f32 %v1036_v37  ;;  %v1038_v32 = vadd.f32 %v1037_v34, %v2679_v22 }
 0x239   : > { %v1916_v36 = vpop.eup %1915  ;;  %v1041_v41 = vpop.f32.mrf.mxu1 }
 0x23a   : > { %v1315_v42 = vadd.f32 %v1914_v35, %v1283_v31  ;;  %vm1220_vm6 = vcmp.lt.f32.partialorder %v1916_v36, 0.0  ;;  %v1042_v43 = vadd.f32 %v1041_v41, %v2675_v20  ;;  %1929 = vtanh.f32 %v1038_v32  ;;  %v320_v32 = vld [vmem:[%s2341_s30 + $0xc8] sm:$0xff] }
 0x23b   : > { %v1252_v44 = vsel %vm1220_vm6, nan, %v1916_v36  ;;  %v1043_v45 = vpop.f32.mrf.mxu1  ;;  %v1918_v46 = vpop.eup %1917 }
 0x23c   : > { %1379 = vst [vmem:[%s2358_s24 + $0x58] sm:$0xff] %v1315_v42  ;;  %v1284_v47 = vmul.f32 %v1252_v44, %v314_v0  ;;  %1931 = vtanh.f32 %v1042_v43  ;;  %v1044_v48 = vadd.f32 %v1043_v45, %v2679_v22 }
 0x23d   : > { %v1920_v49 = vpop.eup %1919  ;;  %v1045_v51 = vpop.f32.mrf.mxu1 }
 0x23e   : > { %v1316_v52 = vadd.f32 %v1918_v46, %v1284_v47  ;;  %vm1221_vm7 = vcmp.lt.f32.partialorder %v1920_v49, 0.0  ;;  %v1046_v53 = vadd.f32 %v1045_v51, %v2675_v20  ;;  %1933 = vtanh.f32 %v1044_v48  ;;  %v321_v48 = vld [vmem:[%s2341_s30 + $0xd8] sm:$0xff] }
 0x23f   : > { %v1253_v54 = vsel %vm1221_vm7, nan, %v1920_v49  ;;  %v1047_v55 = vpop.f32.mrf.mxu1  ;;  %v1922_v56 = vpop.eup %1921 }
 0x240   : > { %1380 = vst [vmem:[%s2358_s24 + $0x68] sm:$0xff] %v1316_v52  ;;  %v1285_v57 = vmul.f32 %v1253_v54, %v315_v50  ;;  %1935 = vtanh.f32 %v1046_v53  ;;  %v1048_v58 = vadd.f32 %v1047_v55, %v2679_v22 }
 0x241   : > { %v1924_v59 = vpop.eup %1923  ;;  %v1051_v61 = vpop.f32.mrf.mxu1 }
 0x242   : > { %v1317_v62 = vadd.f32 %v1922_v56, %v1285_v57  ;;  %vm1222_vm8 = vcmp.lt.f32.partialorder %v1924_v59, 0.0  ;;  %v1052_v63 = vadd.f32 %v1051_v61, %v2675_v20  ;;  %1937 = vtanh.f32 %v1048_v58  ;;  %v322_v58 = vld [vmem:[%s2341_s30 + $0xe8] sm:$0xff] }
 0x243   : > { %v1254_v1 = vsel %vm1222_vm8, nan, %v1924_v59  ;;  %v1053_v2 = vpop.f32.mrf.mxu1  ;;  %v1926_v3 = vpop.eup %1925 }
 0x244   : > { %1381 = vst [vmem:[%s2358_s24 + $0x78] sm:$0xff] %v1317_v62  ;;  %v1286_v4 = vmul.f32 %v1254_v1, %v316_v60  ;;  %1939 = vtanh.f32 %v1052_v63  ;;  %v1054_v5 = vadd.f32 %v1053_v2, %v2679_v22 }
 0x245   : > { %v1928_v6 = vpop.eup %1927  ;;  %v1055_v8 = vpop.f32.mrf.mxu1 }
 0x246   : > { %v1318_v9 = vadd.f32 %v1926_v3, %v1286_v4  ;;  %vm1223_vm9 = vcmp.lt.f32.partialorder %v1928_v6, 0.0  ;;  %v1056_v10 = vadd.f32 %v1055_v8, %v2675_v20  ;;  %1941 = vtanh.f32 %v1054_v5  ;;  %v323_v5 = vld [vmem:[%s2341_s30 + $0xf8] sm:$0xff] }
 0x247   : > { %v1255_v11 = vsel %vm1223_vm9, nan, %v1928_v6  ;;  %v1057_v12 = vpop.f32.mrf.mxu1  ;;  %v1930_v13 = vpop.eup %1929 }
 0x248   : > { %1382 = vst [vmem:[%s2358_s24 + $0x88] sm:$0xff] %v1318_v9  ;;  %v1287_v17 = vmul.f32 %v1255_v11, %v317_v7  ;;  %1943 = vtanh.f32 %v1056_v10  ;;  %v1058_v14 = vadd.f32 %v1057_v12, %v2679_v22 }
 0x249   : > { %v1932_v15 = vpop.eup %1931  ;;  %v1061_v40 = vpop.f32.mrf.mxu1 }
 0x24a   : > { %v1319_v33 = vadd.f32 %v1930_v13, %v1287_v17  ;;  %vm1224_vm10 = vcmp.lt.f32.partialorder %v1932_v15, 0.0  ;;  %v1062_v38 = vadd.f32 %v1061_v40, %v2675_v20  ;;  %1945 = vtanh.f32 %v1058_v14  ;;  %v324_v14 = vld [vmem:[%s2341_s30 + $0x108] sm:$0xff] }
 0x24b   : > { %v1256_v16 = vsel %vm1224_vm10, nan, %v1932_v15  ;;  %v1063_v39 = vpop.f32.mrf.mxu1  ;;  %v1934_v18 = vpop.eup %1933 }
 0x24c   : > { %1383 = vst [vmem:[%s2358_s24 + $0x98] sm:$0xff] %v1319_v33  ;;  %v1288_v19 = vmul.f32 %v1256_v16, %v318_v21  ;;  %1947 = vtanh.f32 %v1062_v38  ;;  %v1064_v23 = vadd.f32 %v1063_v39, %v2679_v22 }
 0x24d   : > { %v1936_v24 = vpop.eup %1935  ;;  %v1065_v26 = vpop.f32.mrf.mxu1 }
 0x24e   : > { %v1320_v27 = vadd.f32 %v1934_v18, %v1288_v19  ;;  %vm1225_vm11 = vcmp.lt.f32.partialorder %v1936_v24, 0.0  ;;  %v1066_v28 = vadd.f32 %v1065_v26, %v2675_v20  ;;  %1949 = vtanh.f32 %v1064_v23  ;;  %v325_v23 = vld [vmem:[%s2341_s30 + $0x118] sm:$0xff] }
 0x24f   : > { %v1257_v29 = vsel %vm1225_vm11, nan, %v1936_v24  ;;  %v1067_v37 = vpop.f32.mrf.mxu1  ;;  %v1938_v30 = vpop.eup %1937 }
 0x250   : > { %1384 = vst [vmem:[%s2358_s24 + $0xa8] sm:$0xff] %v1320_v27  ;;  %v1289_v34 = vmul.f32 %v1257_v29, %v319_v25  ;;  %1951 = vtanh.f32 %v1066_v28  ;;  %v1068_v35 = vadd.f32 %v1067_v37, %v2679_v22 }
 0x251   : > { %v1940_v31 = vpop.eup %1939  ;;  %v1071_v36 = vpop.f32.mrf.mxu1 }
 0x252   : > { %v1321_v0 = vadd.f32 %v1938_v30, %v1289_v34  ;;  %vm1226_vm12 = vcmp.lt.f32.partialorder %v1940_v31, 0.0  ;;  %v1072_v41 = vadd.f32 %v1071_v36, %v2675_v20  ;;  %1953 = vtanh.f32 %v1068_v35  ;;  %v326_v35 = vld [vmem:[%s2341_s30 + $0x128] sm:$0xff] }
 0x253   : > { %v1258_v42 = vsel %vm1226_vm12, nan, %v1940_v31  ;;  %v1073_v43 = vpop.f32.mrf.mxu1  ;;  %v1942_v44 = vpop.eup %1941 }
 0x254   : > { %1385 = vst [vmem:[%s2358_s24 + $0xb8] sm:$0xff] %v1321_v0  ;;  %v1290_v45 = vmul.f32 %v1258_v42, %v320_v32  ;;  %1955 = vtanh.f32 %v1072_v41  ;;  %v1074_v46 = vadd.f32 %v1073_v43, %v2679_v22 }
 0x255   : > { %v1944_v47 = vpop.eup %1943  ;;  %v1075_v49 = vpop.f32.mrf.mxu1 }
 0x256   : > { %v1322_v50 = vadd.f32 %v1942_v44, %v1290_v45  ;;  %vm1227_vm13 = vcmp.lt.f32.partialorder %v1944_v47, 0.0  ;;  %v1076_v51 = vadd.f32 %v1075_v49, %v2675_v20  ;;  %1957 = vtanh.f32 %v1074_v46  ;;  %v327_v46 = vld [vmem:[%s2341_s30 + $0x138] sm:$0xff] }
 0x257   : > { %v1259_v52 = vsel %vm1227_vm13, nan, %v1944_v47  ;;  %v1077_v53 = vpop.f32.mrf.mxu1  ;;  %v1946_v54 = vpop.eup %1945 }
 0x258   : > { %1386 = vst [vmem:[%s2358_s24 + $0xc8] sm:$0xff] %v1322_v50  ;;  %v1291_v55 = vmul.f32 %v1259_v52, %v321_v48  ;;  %1959 = vtanh.f32 %v1076_v51  ;;  %v1078_v56 = vadd.f32 %v1077_v53, %v2679_v22 }
 0x259   : > { %v1948_v57 = vpop.eup %1947  ;;  %v1081_v59 = vpop.f32.mrf.mxu1 }
 0x25a   : > { %v1323_v60 = vadd.f32 %v1946_v54, %v1291_v55  ;;  %vm1228_vm14 = vcmp.lt.f32.partialorder %v1948_v57, 0.0  ;;  %v1082_v61 = vadd.f32 %v1081_v59, %v2675_v20  ;;  %1961 = vtanh.f32 %v1078_v56  ;;  %v328_v56 = vld [vmem:[%s2341_s30 + $0x148] sm:$0xff] }
 0x25b   : > { %v1260_v62 = vsel %vm1228_vm14, nan, %v1948_v57  ;;  %v1083_v63 = vpop.f32.mrf.mxu1  ;;  %v1950_v1 = vpop.eup %1949 }
 0x25c   : > { %1387 = vst [vmem:[%s2358_s24 + $0xd8] sm:$0xff] %v1323_v60  ;;  %v1292_v2 = vmul.f32 %v1260_v62, %v322_v58  ;;  %1963 = vtanh.f32 %v1082_v61  ;;  %v1084_v3 = vadd.f32 %v1083_v63, %v2679_v22 }
 0x25d   : > { %v1952_v4 = vpop.eup %1951  ;;  %v1085_v6 = vpop.f32.mrf.mxu1 }
 0x25e   : > { %v1324_v7 = vadd.f32 %v1950_v1, %v1292_v2  ;;  %vm1229_vm15 = vcmp.lt.f32.partialorder %v1952_v4, 0.0  ;;  %v1086_v8 = vadd.f32 %v1085_v6, %v2675_v20  ;;  %1965 = vtanh.f32 %v1084_v3  ;;  %v329_v3 = vld [vmem:[%s2341_s30 + $0x158] sm:$0xff] }
 0x25f   : > { %v1261_v9 = vsel %vm1229_vm15, nan, %v1952_v4  ;;  %v1087_v10 = vpop.f32.mrf.mxu1  ;;  %v1954_v11 = vpop.eup %1953 }
 0x260   : > { %1388 = vst [vmem:[%s2358_s24 + $0xe8] sm:$0xff] %v1324_v7  ;;  %v1293_v12 = vmul.f32 %v1261_v9, %v323_v5  ;;  %1967 = vtanh.f32 %v1086_v8  ;;  %v1088_v13 = vadd.f32 %v1087_v10, %v2679_v22 }
 0x261   : > { %v1956_v17 = vpop.eup %1955  ;;  %v1091_v15 = vpop.f32.mrf.mxu1 }
 0x262   : > { %v1325_v21 = vadd.f32 %v1954_v11, %v1293_v12  ;;  %vm1230_vm0 = vcmp.lt.f32.partialorder %v1956_v17, 0.0  ;;  %v1092_v40 = vadd.f32 %v1091_v15, %v2675_v20  ;;  %1969 = vtanh.f32 %v1088_v13  ;;  %v330_v13 = vld [vmem:[%s2341_s30 + $0x168] sm:$0xff] }
 0x263   : > { %v1262_v33 = vsel %vm1230_vm0, nan, %v1956_v17  ;;  %v1093_v38 = vpop.f32.mrf.mxu1  ;;  %v1958_v16 = vpop.eup %1957 }
 0x264   : > { %1389 = vst [vmem:[%s2358_s24 + $0xf8] sm:$0xff] %v1325_v21  ;;  %v1294_v39 = vmul.f32 %v1262_v33, %v324_v14  ;;  %1971 = vtanh.f32 %v1092_v40  ;;  %v1094_v18 = vadd.f32 %v1093_v38, %v2679_v22 }
 0x265   : > { %v1960_v19 = vpop.eup %1959  ;;  %v1095_v24 = vpop.f32.mrf.mxu1 }
 0x266   : > { %v1326_v25 = vadd.f32 %v1958_v16, %v1294_v39  ;;  %vm1231_vm1 = vcmp.lt.f32.partialorder %v1960_v19, 0.0  ;;  %v1096_v26 = vadd.f32 %v1095_v24, %v2675_v20  ;;  %1973 = vtanh.f32 %v1094_v18  ;;  %v331_v18 = vld [vmem:[%s2341_s30 + $0x178] sm:$0xff] }
 0x267   : > { %v1263_v27 = vsel %vm1231_vm1, nan, %v1960_v19  ;;  %v1097_v28 = vpop.f32.mrf.mxu1  ;;  %v1962_v29 = vpop.eup %1961 }
 0x268   : > { %1390 = vst [vmem:[%s2358_s24 + $0x108] sm:$0xff] %v1326_v25  ;;  %v1295_v37 = vmul.f32 %v1263_v27, %v325_v23  ;;  %1975 = vtanh.f32 %v1096_v26  ;;  %v1098_v30 = vadd.f32 %v1097_v28, %v2679_v22 }
 0x269   : > { %v1964_v34 = vpop.eup %1963  ;;  %v1101_v31 = vpop.f32.mrf.mxu1 }
 0x26a   : > { %v1327_v32 = vadd.f32 %v1962_v29, %v1295_v37  ;;  %vm1232_vm2 = vcmp.lt.f32.partialorder %v1964_v34, 0.0  ;;  %v1102_v36 = vadd.f32 %v1101_v31, %v2675_v20  ;;  %1977 = vtanh.f32 %v1098_v30  ;;  %v332_v30 = vld [vmem:[%s2341_s30 + $0x188] sm:$0xff] }
 0x26b   : > { %v1264_v0 = vsel %vm1232_vm2, nan, %v1964_v34  ;;  %v1103_v41 = vpop.f32.mrf.mxu1  ;;  %v1966_v42 = vpop.eup %1965 }
 0x26c   : > { %1391 = vst [vmem:[%s2358_s24 + $0x118] sm:$0xff] %v1327_v32  ;;  %v1296_v43 = vmul.f32 %v1264_v0, %v326_v35  ;;  %1979 = vtanh.f32 %v1102_v36  ;;  %v1104_v44 = vadd.f32 %v1103_v41, %v2679_v22 }
 0x26d   : > { %v1968_v45 = vpop.eup %1967  ;;  %v1105_v47 = vpop.f32.mrf.mxu1 }
 0x26e   : > { %v1328_v48 = vadd.f32 %v1966_v42, %v1296_v43  ;;  %vm1233_vm3 = vcmp.lt.f32.partialorder %v1968_v45, 0.0  ;;  %v1106_v49 = vadd.f32 %v1105_v47, %v2675_v20  ;;  %1981 = vtanh.f32 %v1104_v44  ;;  %v333_v44 = vld [vmem:[%s2341_s30 + $0x198] sm:$0xff] }
 0x26f   : > { %v1265_v50 = vsel %vm1233_vm3, nan, %v1968_v45  ;;  %v1107_v51 = vpop.f32.mrf.mxu1  ;;  %v1970_v52 = vpop.eup %1969 }
 0x270   : > { %1392 = vst [vmem:[%s2358_s24 + $0x128] sm:$0xff] %v1328_v48  ;;  %v1297_v53 = vmul.f32 %v1265_v50, %v327_v46  ;;  %1983 = vtanh.f32 %v1106_v49  ;;  %v1108_v54 = vadd.f32 %v1107_v51, %v2679_v22 }
 0x271   : > { %v1972_v55 = vpop.eup %1971  ;;  %v1111_v57 = vpop.f32.mrf.mxu1 }
 0x272   : > { %v1329_v58 = vadd.f32 %v1970_v52, %v1297_v53  ;;  %vm1234_vm4 = vcmp.lt.f32.partialorder %v1972_v55, 0.0  ;;  %v1112_v59 = vadd.f32 %v1111_v57, %v2675_v20  ;;  %1985 = vtanh.f32 %v1108_v54  ;;  %v334_v54 = vld [vmem:[%s2341_s30 + $0x1a8] sm:$0xff] }
 0x273   : > { %v1266_v60 = vsel %vm1234_vm4, nan, %v1972_v55  ;;  %v1113_v61 = vpop.f32.mrf.mxu1  ;;  %v1974_v62 = vpop.eup %1973 }
 0x274   : > { %1393 = vst [vmem:[%s2358_s24 + $0x138] sm:$0xff] %v1329_v58  ;;  %v1298_v63 = vmul.f32 %v1266_v60, %v328_v56  ;;  %1987 = vtanh.f32 %v1112_v59  ;;  %v1114_v1 = vadd.f32 %v1113_v61, %v2679_v22 }
 0x275   : > { %v1976_v2 = vpop.eup %1975  ;;  %v1115_v4 = vpop.f32.mrf.mxu1 }
 0x276   : > { %v1330_v5 = vadd.f32 %v1974_v62, %v1298_v63  ;;  %vm1235_vm5 = vcmp.lt.f32.partialorder %v1976_v2, 0.0  ;;  %v1116_v6 = vadd.f32 %v1115_v4, %v2675_v20  ;;  %1989 = vtanh.f32 %v1114_v1  ;;  %v335_v1 = vld [vmem:[%s2341_s30 + $0x1b8] sm:$0xff] }
 0x277   : > { %v1267_v7 = vsel %vm1235_vm5, nan, %v1976_v2  ;;  %v1117_v8 = vpop.f32.mrf.mxu1  ;;  %v1978_v9 = vpop.eup %1977 }
 0x278   : > { %1394 = vst [vmem:[%s2358_s24 + $0x148] sm:$0xff] %v1330_v5  ;;  %v1299_v10 = vmul.f32 %v1267_v7, %v329_v3  ;;  %1991 = vtanh.f32 %v1116_v6  ;;  %v1118_v11 = vadd.f32 %v1117_v8, %v2679_v22 }
 0x279   : > { %v1980_v12 = vpop.eup %1979  ;;  %v1121_v17 = vpop.f32.mrf.mxu1 }
 0x27a   : > { %v1331_v14 = vadd.f32 %v1978_v9, %v1299_v10  ;;  %vm1236_vm6 = vcmp.lt.f32.partialorder %v1980_v12, 0.0  ;;  %v1122_v15 = vadd.f32 %v1121_v17, %v2675_v20  ;;  %1993 = vtanh.f32 %v1118_v11  ;;  %v336_v11 = vld [vmem:[%s2341_s30 + $0x1c8] sm:$0xff] }
 0x27b   : > { %v1268_v21 = vsel %vm1236_vm6, nan, %v1980_v12  ;;  %v1123_v40 = vpop.f32.mrf.mxu1  ;;  %v1982_v33 = vpop.eup %1981 }
 0x27c   : > { %1395 = vst [vmem:[%s2358_s24 + $0x158] sm:$0xff] %v1331_v14  ;;  %v1300_v38 = vmul.f32 %v1268_v21, %v330_v13  ;;  %1995 = vtanh.f32 %v1122_v15  ;;  %v1124_v16 = vadd.f32 %v1123_v40, %v2679_v22  ;;  %v337_v15 = vld [vmem:[%s2341_s30 + $0x1d8] sm:$0xff] }
 0x27d   : > { %v1984_v39 = vpop.eup %1983  ;;  %v1125_v19 = vpop.f32.mrf.mxu1 }
 0x27e   : > { %v1332_v23 = vadd.f32 %v1982_v33, %v1300_v38  ;;  %vm1237_vm7 = vcmp.lt.f32.partialorder %v1984_v39, 0.0  ;;  %v1126_v24 = vadd.f32 %v1125_v19, %v2675_v20  ;;  %1997 = vtanh.f32 %v1124_v16  ;;  %v338_v16 = vld [vmem:[%s2341_s30 + $0x1e8] sm:$0xff] }
 0x27f   : > { %v1269_v25 = vsel %vm1237_vm7, nan, %v1984_v39  ;;  %v1127_v26 = vpop.f32.mrf.mxu1  ;;  %v1986_v27 = vpop.eup %1985 }
 0x280   : > { %1396 = vst [vmem:[%s2358_s24 + $0x168] sm:$0xff] %v1332_v23  ;;  %v1301_v28 = vmul.f32 %v1269_v25, %v331_v18  ;;  %1999 = vtanh.f32 %v1126_v24  ;;  %v1128_v29 = vadd.f32 %v1127_v26, %v2679_v22  ;;  %v339_v25 = vld [vmem:[%s2341_s30 + $0x1f8] sm:$0xff] }
 0x281   : > { %v1988_v37 = vpop.eup %1987  ;;  %v1131_v34 = vpop.f32.mrf.mxu1 }
 0x282   : > { %v1333_v35 = vadd.f32 %v1986_v27, %v1301_v28  ;;  %vm1238_vm8 = vcmp.lt.f32.partialorder %v1988_v37, 0.0  ;;  %v1132_v31 = vadd.f32 %v1131_v34, %v2675_v20  ;;  %2001 = vtanh.f32 %v1128_v29 }
 0x283   : > { %v1270_v32 = vsel %vm1238_vm8, nan, %v1988_v37  ;;  %v1133_v36 = vpop.f32.mrf.mxu1  ;;  %v1990_v0 = vpop.eup %1989 }
 0x284   : > { %1397 = vst [vmem:[%s2358_s24 + $0x178] sm:$0xff] %v1333_v35  ;;  %v1302_v41 = vmul.f32 %v1270_v32, %v332_v30  ;;  %2003 = vtanh.f32 %v1132_v31  ;;  %v1134_v42 = vadd.f32 %v1133_v36, %v2679_v22 }
 0x285   : > { %v1992_v43 = vpop.eup %1991  ;;  %v1135_v45 = vpop.f32.mrf.mxu1 }
 0x286   : > { %v1334_v46 = vadd.f32 %v1990_v0, %v1302_v41  ;;  %vm1239_vm9 = vcmp.lt.f32.partialorder %v1992_v43, 0.0  ;;  %v1136_v47 = vadd.f32 %v1135_v45, %v2675_v20  ;;  %2005 = vtanh.f32 %v1134_v42 }
 0x287   : > { %v1271_v48 = vsel %vm1239_vm9, nan, %v1992_v43  ;;  %v1137_v49 = vpop.f32.mrf.mxu1  ;;  %v1994_v50 = vpop.eup %1993 }
 0x288   : > { %1398 = vst [vmem:[%s2358_s24 + $0x188] sm:$0xff] %v1334_v46  ;;  %v1303_v51 = vmul.f32 %v1271_v48, %v333_v44  ;;  %2007 = vtanh.f32 %v1136_v47  ;;  %v1138_v52 = vadd.f32 %v1137_v49, %v2679_v22 }
 0x289   : > { %v1996_v53 = vpop.eup %1995  ;;  %v1141_v55 = vpop.f32.mrf.mxu1 }
 0x28a   : > { %v1335_v56 = vadd.f32 %v1994_v50, %v1303_v51  ;;  %vm1240_vm10 = vcmp.lt.f32.partialorder %v1996_v53, 0.0  ;;  %v1142_v57 = vadd.f32 %v1141_v55, %v2675_v20  ;;  %2009 = vtanh.f32 %v1138_v52 }
 0x28b   : > { %v1272_v58 = vsel %vm1240_vm10, nan, %v1996_v53  ;;  %v1143_v59 = vpop.f32.mrf.mxu1  ;;  %v1998_v60 = vpop.eup %1997 }
 0x28c   : > { %1399 = vst [vmem:[%s2358_s24 + $0x198] sm:$0xff] %v1335_v56  ;;  %v1304_v61 = vmul.f32 %v1272_v58, %v334_v54  ;;  %2011 = vtanh.f32 %v1142_v57  ;;  %v1144_v62 = vadd.f32 %v1143_v59, %v2679_v22 }
 0x28d   : > { %v2000_v63 = vpop.eup %1999  ;;  %v1145_v2 = vpop.f32.mrf.mxu1 }
 0x28e   : > { %v1336_v3 = vadd.f32 %v1998_v60, %v1304_v61  ;;  %vm1241_vm11 = vcmp.lt.f32.partialorder %v2000_v63, 0.0  ;;  %v1146_v4 = vadd.f32 %v1145_v2, %v2675_v20  ;;  %2013 = vtanh.f32 %v1144_v62 }
 0x28f   : > { %v1273_v5 = vsel %vm1241_vm11, nan, %v2000_v63  ;;  %v1147_v6 = vpop.f32.mrf.mxu1  ;;  %v2002_v7 = vpop.eup %2001 }
 0x290   : > { %1400 = vst [vmem:[%s2358_s24 + $0x1a8] sm:$0xff] %v1336_v3  ;;  %v1305_v8 = vmul.f32 %v1273_v5, %v335_v1  ;;  %2015 = vtanh.f32 %v1146_v4  ;;  %v1148_v9 = vadd.f32 %v1147_v6, %v2679_v22 }
 0x291   : > { %v2004_v10 = vpop.eup %2003 }
 0x292   : > { %v1337_v12 = vadd.f32 %v2002_v7, %v1305_v8  ;;  %vm1242_vm12 = vcmp.lt.f32.partialorder %v2004_v10, 0.0  ;;  %2017 = vtanh.f32 %v1148_v9 }
 0x293   : > { %v1274_v13 = vsel %vm1242_vm12, nan, %v2004_v10  ;;  %v2006_v17 = vpop.eup %2005 }
 0x294   : > { %1401 = vst [vmem:[%s2358_s24 + $0x1b8] sm:$0xff] %v1337_v12  ;;  %v1306_v20 = vmul.f32 %v1274_v13, %v336_v11 }
 0x295   : > { %v2008_v14 = vpop.eup %2007 }
 0x296   : > { %v1338_v21 = vadd.f32 %v2006_v17, %v1306_v20  ;;  %vm1243_vm13 = vcmp.lt.f32.partialorder %v2008_v14, 0.0 }
 0x297   : > { %v1275_v40 = vsel %vm1243_vm13, nan, %v2008_v14  ;;  %v2010_v22 = vpop.eup %2009 }
 0x298   : > { %1402 = vst [vmem:[%s2358_s24 + $0x1c8] sm:$0xff] %v1338_v21  ;;  %v1307_v33 = vmul.f32 %v1275_v40, %v337_v15 }
 0x299   : > { %v2012_v38 = vpop.eup %2011 }
 0x29a   : > { %v1339_v39 = vadd.f32 %v2010_v22, %v1307_v33  ;;  %vm1244_vm14 = vcmp.lt.f32.partialorder %v2012_v38, 0.0 }
 0x29b   : > { %v1276_v18 = vsel %vm1244_vm14, nan, %v2012_v38  ;;  %v2014_v19 = vpop.eup %2013 }
 0x29c   : > { %1403 = vst [vmem:[%s2358_s24 + $0x1d8] sm:$0xff] %v1339_v39  ;;  %v1308_v23 = vmul.f32 %v1276_v18, %v338_v16 }
 0x29d   : > { %v2016_v24 = vpop.eup %2015 }
 0x29e   : > { %v1340_v26 = vadd.f32 %v2014_v19, %v1308_v23  ;;  %vm1245_vm15 = vcmp.lt.f32.partialorder %v2016_v24, 0.0 }
 0x29f   : > { %v1277_v27 = vsel %vm1245_vm15, nan, %v2016_v24  ;;  %v2018_v29 = vpop.eup %2017 }
 0x2a0   : > { %1404 = vst [vmem:[%s2358_s24 + $0x1e8] sm:$0xff] %v1340_v26  ;;  %v1309_v28 = vmul.f32 %v1277_v27, %v339_v25 }
 0x2a2   : > { %v1341_v37 = vadd.f32 %v2018_v29, %v1309_v28 }
 0x2a4   : > { %1405 = vst [vmem:[%s2358_s24 + $0x1f8] sm:$0xff] %v1341_v37 }
 0x2a5   : > { %2112 = shalt.err (!%p2109_p9)
}
 0x2a6   : > { %s2113_s30 = scalar_lea.hbm %s2813_s9, 8192  ;;  %s2117_s8 = scalar_lea.hbm %s2864_s5, 16384 }
 0x2a7   : > { %p2114_p13 = scmp.ne.s32.totalorder %s2813_s9, %s2113_s30  ;;  %p2118_p4 = scmp.lt.s32.totalorder %s2813_s9, %s2864_s5 }
 0x2a8   : > { %p2119_p8 = scmp.lt.s32.totalorder %s2117_s8, %s2113_s30 }
 0x2a9   : > { %p2115_p5 = pnand %p2114_p13, %p2880_p10 }
 0x2aa   : > { %p2120_p3 = por %p2119_p8, %p2118_p4 }
 0x2ab   : > { %p2116_p0 = pneg %p2115_p5 }
 0x2ad   : > { %p2121_p11 = pnand %p2120_p3, %p2116_p0 }
 0x2af   : > { %2124 = shalt.err (!%p2121_p11)
}
 0x2b0   : > { %s2178_s12 = smov 256   ;;  %s2179_s6 = smov 16  }
 0x2b1   : > { %1627 = dma.vmem_to_hbm [thread:$0]  (%p2880_p10), %s2815_s28, 8192, %s2813_s9, %s1407_s13, %s2178_s12, %s2178_s12, %s2179_s6  }
 0x2b2 PF: > { %s1436_s7 = sand.u32 1, %s2155_s18   ;;  %p2881_p1 = scmp.ne.s32.totalorder %s2870_s25, 0 }
 0x2b3   : > { %p2882_p2 = scmp.ge.s32.totalorder %s2167_s21, 2  ;;  %s1437_s14 = scalar_lea.sflag [#allocation4], %s1436_s7 }
 0x2b5   : > { %p1641_p6 = pnand %p2882_p2, %p2881_p1 }
 0x2b7   : > { %p1642_p12 = pneg %p1641_p6 }
 0x2b9   : > { %2150 = dma.done.wait (%p1642_p12), %s1437_s14, 8192  }
 0x2ba   : > { %2152 = vsyncadd (%p1642_p12), %s1437_s14, 4294959104  ;;  %p19_p7 = scmp.ge.s32.totalorder %s2282_s15, 4   ;;  %s2883_s18 = smov %s2159_s19 }
 0x2bb   : > { %s2884_s19 = smov %s2163_s20  ;;  %s2885_s20 = smov %s2298_s27 }
 0x2bc   : > { %s2886_s21 = smov %s2282_s15  ;;  %21 = sbr.rel (!%p19_p7) target bundleno = 6 (0x6), region = 93 }
 0x2c1   :  { %1442 = vsyncpa [#allocation3], 1 }
 0x2c2   :  { %1444 = vsyncpa [#allocation3 + $0x1], 1 }
 0x2c3   :  { %1445 = vsyncpa [#allocation6], 1 }
 0x2c4   :  { %1446 = vsyncpa [#allocation4], 1 }
 0x2c5   :  { %1448 = vsyncpa [#allocation4 + $0x1], 1 }

</bundles_post_ra>
